<compile_context>
chip_gen: v7x
topology: tpu7x:2x2x1
jax: 0.10.0
libtpu: 0.0.40
codegen_flags: <defaults>
</compile_context>

<pallas_src>
import functools
import math

import jax
import jax.numpy as jnp
from jax.experimental import pallas as pl
from jax.experimental.pallas import tpu as pltpu

_NEG_BIG = -1e30                 # finite mask value (no -inf - -inf NaNs)
_VMEM_LIMIT = 32 * 1024 * 1024   # > v5e 16MiB scoped default, <= v7x physical


# ----------------------------------------------------------------------------
# tiling helpers
# ----------------------------------------------------------------------------
def _round_up(x, m):
    return (x + m - 1) // m * m


def _plan_dim(dim, align):
    """Return (padded_dim, tile) for one matmul dimension.

    dims <= 512: one full-extent block (always layout-legal, never huge).
    larger dims: 512/256/128 tile; very large awkward dims (e.g. vocab 50257)
    are padded up to a 512 multiple so we keep 512-wide tiles instead of a
    (tk, V) mega-block that overflows VMEM on v7x.
    """
    if dim <= 512:
        return dim, dim
    p = _round_up(dim, align)
    for t in (512, 256, 128):
        if p % t == 0:
            if t < 512 and dim >= 4096:
                break  # big dim: pay a little padding for 512-wide tiles
            return p, t
    p = _round_up(dim, 512)
    return p, 512


# ----------------------------------------------------------------------------
# GELU (exact / erf form, as nn.GELU default) with cheap epilogue math
# ----------------------------------------------------------------------------
def _gelu(x):
    # erf via Abramowitz & Stegun 7.1.26 (|err| ~ 1.5e-7): only exp / mul / add
    # plus an approx reciprocal (EUP slot) instead of a full VALU divide.
    a1, a2, a3, a4, a5 = (0.254829592, -0.284496736, 1.421413741,
                          -1.453152027, 1.061405429)
    pconst = 0.3275911
    z = x * 0.7071067811865476
    az = jnp.abs(z)
    t = pl.reciprocal(1.0 + pconst * az, approx=True)
    poly = ((((a5 * t + a4) * t + a3) * t + a2) * t + a1) * t
    erf = 1.0 - poly * jnp.exp(-az * az)
    erf = jnp.where(z >= 0.0, erf, -erf)
    return 0.5 * x * (1.0 + erf)


# ----------------------------------------------------------------------------
# LayerNorm kernel (tiled over rows, full feature dim per block)
# ----------------------------------------------------------------------------
def _layernorm_kernel(x_ref, scale_ref, shift_ref, o_ref):
    x = x_ref[...].astype(jnp.float32)
    mean = jnp.mean(x, axis=-1, keepdims=True)
    var = jnp.mean((x - mean) ** 2, axis=-1, keepdims=True)   # unbiased=False
    rstd = jax.lax.rsqrt(var + 1e-5)                          # EUP slot
    y = scale_ref[...] * ((x - mean) * rstd) + shift_ref[...]
    o_ref[...] = y.astype(o_ref.dtype)


def layernorm(x2d, scale, shift, *, out_dtype=jnp.bfloat16):
    M, D = x2d.shape
    # VMEM-budget-derived row tile (per-TC budget, v7x 64MiB-safe):
    # f32 input x2 buffers + output x2 buffers per row, ~8 MiB target.
    per_row = D * (4 * 2 + jnp.dtype(out_dtype).itemsize * 2)
    cap = max(8, (8 * 2**20) // per_row)
    tm, Mp = None, M
    for c in (1024, 512, 256, 128, 64, 32, 16, 8):
        if c <= cap and M % c == 0:
            tm = c
            break
    if tm is None:
        tm = max(8, (min(cap, 256) // 8) * 8)
        Mp = _round_up(M, tm)
        x2d = jnp.pad(x2d, ((0, Mp - M), (0, 0)))
    out = pl.pallas_call(
        _layernorm_kernel,
        out_shape=jax.ShapeDtypeStruct((Mp, D), out_dtype),
        grid_spec=pltpu.PrefetchScalarGridSpec(
            num_scalar_prefetch=0,
            grid=(Mp // tm,),
            in_specs=[pl.BlockSpec((tm, D), lambda i: (i, 0)),
                      pl.BlockSpec((1, D), lambda i: (0, 0)),
                      pl.BlockSpec((1, D), lambda i: (0, 0))],
            out_specs=pl.BlockSpec((tm, D), lambda i: (i, 0)),
        ),
        compiler_params=pltpu.CompilerParams(
            dimension_semantics=("parallel",),
            vmem_limit_bytes=_VMEM_LIMIT),
    )(x2d, scale.reshape(1, D), shift.reshape(1, D))
    return out[:M] if Mp != M else out


# ----------------------------------------------------------------------------
# Tiled linear kernel: y = act(x @ w [+ b]) [+ residual]
#   bf16 MXU inputs, f32 accumulator, epilogue fused into the K finalize.
# ----------------------------------------------------------------------------
def _linear_kernel(*refs, n_k, activation, has_bias, has_residual):
    x_ref, w_ref = refs[0], refs[1]
    pos = 2
    b_ref = None
    if has_bias:
        b_ref = refs[pos]
        pos += 1
    r_ref = None
    if has_residual:
        r_ref = refs[pos]
        pos += 1
    o_ref, acc_ref = refs[pos], refs[pos + 1]

    @pl.when(pl.program_id(2) == 0)
    def _():
        acc_ref[...] = jnp.zeros_like(acc_ref)

    acc_ref[...] += jnp.dot(x_ref[...], w_ref[...],
                            preferred_element_type=jnp.float32)

    @pl.when(pl.program_id(2) == n_k - 1)
    def _():
        y = acc_ref[...]
        if b_ref is not None:
            y = y + b_ref[...].astype(jnp.float32)
        if activation == "gelu":
            y = _gelu(y)
        if r_ref is not None:
            y = y + r_ref[...].astype(jnp.float32)
        o_ref[...] = y.astype(o_ref.dtype)


def linear(x2d, w, b=None, *, activation=None, residual=None,
           out_dtype=jnp.float32):
    M, K = x2d.shape
    Kw, N = w.shape
    assert K == Kw
    Mp, tm = _plan_dim(M, align=8)      # sublane dim
    Np, tn = _plan_dim(N, align=128)    # lane dim
    Kp, tk = _plan_dim(K, align=128)    # lane (x) / sublane (w) dim
    if Mp != M or Kp != K:
        x2d = jnp.pad(x2d, ((0, Mp - M), (0, Kp - K)))
    if Kp != K or Np != N:
        w = jnp.pad(w, ((0, Kp - K), (0, Np - N)))

    in_specs = [pl.BlockSpec((tm, tk), lambda i, j, k: (i, k)),
                pl.BlockSpec((tk, tn), lambda i, j, k: (k, j))]
    args = [x2d, w]
    if b is not None:
        bb = b.reshape(1, N)
        if Np != N:
            bb = jnp.pad(bb, ((0, 0), (0, Np - N)))
        in_specs.append(pl.BlockSpec((1, tn), lambda i, j, k: (0, j)))
        args.append(bb)
    if residual is not None:
        r = residual
        if Mp != M or Np != N:
            r = jnp.pad(r, ((0, Mp - M), (0, Np - N)))
        in_specs.append(pl.BlockSpec((tm, tn), lambda i, j, k: (i, j)))
        args.append(r)

    n_k = Kp // tk
    out_item = jnp.dtype(out_dtype).itemsize
    cost = pl.CostEstimate(
        flops=2 * Mp * Np * Kp,
        transcendentals=(Mp * Np if activation == "gelu" else 0),
        bytes_accessed=(Mp * Kp * x2d.dtype.itemsize
                        + Kp * Np * w.dtype.itemsize
                        + Mp * Np * out_item))

    out = pl.pallas_call(
        functools.partial(_linear_kernel, n_k=n_k, activation=activation,
                          has_bias=b is not None,
                          has_residual=residual is not None),
        out_shape=jax.ShapeDtypeStruct((Mp, Np), out_dtype),
        grid_spec=pltpu.PrefetchScalarGridSpec(
            num_scalar_prefetch=0,
            grid=(Mp // tm, Np // tn, n_k),
            in_specs=in_specs,
            out_specs=pl.BlockSpec((tm, tn), lambda i, j, k: (i, j)),
            scratch_shapes=[pltpu.VMEM((tm, tn), jnp.float32)],
        ),
        compiler_params=pltpu.CompilerParams(
            dimension_semantics=("parallel", "parallel", "arbitrary"),
            vmem_limit_bytes=_VMEM_LIMIT),
        cost_estimate=cost,
    )(*args)
    if Mp != M or Np != N:
        out = out[:M, :N]
    return out


# ----------------------------------------------------------------------------
# Flash-attention style causal attention, all heads per grid step.
#   q/k/v/out stay in (B, S, H*Dh) layout -> no XLA transposes, lane-dense
#   D-wide loads/stores.  Online softmax per head with (H, tq, ...) scratch.
# ----------------------------------------------------------------------------
def _flash_attn_kernel(q_ref, k_ref, v_ref, o_ref, m_ref, l_ref, acc_ref,
                       *, n_heads, d_head, tq, tk, n_kv, scale):
    qi = pl.program_id(1)
    ki = pl.program_id(2)

    @pl.when(ki == 0)
    def _():
        m_ref[...] = jnp.full_like(m_ref, _NEG_BIG)
        l_ref[...] = jnp.zeros_like(l_ref)
        acc_ref[...] = jnp.zeros_like(acc_ref)

    q_start = qi * tq
    k_start = ki * tk
    needed = k_start <= q_start + (tq - 1)        # tile touches/below diagonal
    full_vis = (k_start + (tk - 1)) <= q_start    # entirely below diagonal

    def update(apply_mask):
        q = q_ref[0]          # (tq, H*Dh) bf16
        k = k_ref[0]          # (tk, H*Dh) bf16
        v = v_ref[0]          # (tk, H*Dh) bf16
        if apply_mask:
            row = q_start + jax.lax.broadcasted_iota(jnp.int32, (tq, tk), 0)
            col = k_start + jax.lax.broadcasted_iota(jnp.int32, (tq, tk), 1)
            keep = col <= row
        for h in range(n_heads):                  # static unroll over heads
            sl = slice(h * d_head, (h + 1) * d_head)
            qh = q[:, sl] * scale                 # fold 1/sqrt(dh) into q
            s = jax.lax.dot_general(qh, k[:, sl], (((1,), (1,)), ((), ())),
                                    preferred_element_type=jnp.float32)
            if apply_mask:
                s = jnp.where(keep, s, _NEG_BIG)
            m_prev = m_ref[h]                                     # (tq, 1)
            m_new = jnp.maximum(m_prev, jnp.max(s, axis=-1, keepdims=True))
            alpha = jnp.exp(m_prev - m_new)
            p = jnp.exp(s - m_new)                                # f32 (v5e-safe)
            l_ref[h] = alpha * l_ref[h] + jnp.sum(p, axis=-1, keepdims=True)
            acc_ref[h] = alpha * acc_ref[h] + jnp.dot(
                p.astype(v.dtype), v[:, sl], preferred_element_type=jnp.float32)
            m_ref[h] = m_new

    @pl.when(jnp.logical_and(needed, full_vis))
    def _():
        update(False)                             # interior tiles: no mask

    @pl.when(jnp.logical_and(needed, jnp.logical_not(full_vis)))
    def _():
        update(True)                              # diagonal tiles only

    @pl.when(ki == n_kv - 1)
    def _():
        inv_l = 1.0 / l_ref[...]                  # exact; once per q tile
        out = jnp.concatenate(
            [acc_ref[h] * inv_l[h] for h in range(n_heads)], axis=-1)
        o_ref[0] = out.astype(o_ref.dtype)        # lane-dense D-wide store


def _plan_seq(S, D, H, out_itemsize):
    """Pick tq == tk and the padded sequence length under a per-TC VMEM budget."""
    budget = 20 * 2**20

    def step_bytes(t):
        # q/k/v blocks (bf16, double-buffered) + out (dbl) + f32 acc scratch
        # + m/l scratch (lane-padded to 128).
        return t * D * (12 + 2 * out_itemsize + 4) + 2 * H * t * 512

    for t in (256, 128):
        if S % t == 0 and step_bytes(t) <= budget:
            return S, t
    if S <= 256 and S % 8 == 0 and step_bytes(S) <= budget:
        return S, S
    t = 128
    while t > 8 and step_bytes(t) > budget:
        t //= 2
    return _round_up(S, t), t


def flash_causal_attention(q, k, v, n_heads, *, out_dtype=jnp.bfloat16):
    B, S, D = q.shape
    d_head = D // n_heads
    Sp, t = _plan_seq(S, D, n_heads, jnp.dtype(out_dtype).itemsize)
    if Sp != S:
        # Padded keys land above the causal diagonal for every real query row,
        # so the existing mask handles them; padded query rows are sliced off.
        pad = ((0, 0), (0, Sp - S), (0, 0))
        q, k, v = jnp.pad(q, pad), jnp.pad(k, pad), jnp.pad(v, pad)
    n_kv = Sp // t
    scale = 1.0 / math.sqrt(d_head)

    q_spec = pl.BlockSpec((1, t, D), lambda b, i, j: (b, i, 0))
    # Clamp the kv block index so causally-skipped tiles are never DMA'd
    # (repeated block index -> Pallas issues no new copy).  tq == tk, so the
    # last needed kv tile for q tile i is i.
    kv_spec = pl.BlockSpec((1, t, D), lambda b, i, j: (b, jnp.minimum(j, i), 0))

    out = pl.pallas_call(
        functools.partial(_flash_attn_kernel, n_heads=n_heads, d_head=d_head,
                          tq=t, tk=t, n_kv=n_kv, scale=scale),
        out_shape=jax.ShapeDtypeStruct((B, Sp, D), out_dtype),
        grid_spec=pltpu.PrefetchScalarGridSpec(
            num_scalar_prefetch=0,
            grid=(B, Sp // t, n_kv),          # B * n_q parallel steps (v7x: both TCs)
            in_specs=[q_spec, kv_spec, kv_spec],
            out_specs=pl.BlockSpec((1, t, D), lambda b, i, j: (b, i, 0)),
            scratch_shapes=[pltpu.VMEM((n_heads, t, 1), jnp.float32),   # m
                            pltpu.VMEM((n_heads, t, 1), jnp.float32),   # l
                            pltpu.VMEM((n_heads, t, d_head), jnp.float32)],  # acc
        ),
        compiler_params=pltpu.CompilerParams(
            dimension_semantics=("parallel", "parallel", "arbitrary"),
            vmem_limit_bytes=_VMEM_LIMIT),
    )(q, k, v)
    return out[:, :S, :] if Sp != S else out


# ----------------------------------------------------------------------------
# Parameter construction (deterministic, synthetic).  Matmul weights bf16
# (f32 accumulation in-kernel); layernorm params / biases / embeddings f32.
# ----------------------------------------------------------------------------
def init_params(key, config):
    V = config['vocab_size']
    D = config['emb_dim']
    C = config['context_length']
    H4 = 4 * D
    n_layers = config['n_layers']
    qkv_bias = config.get('qkv_bias', True)

    def nrm(k, shape, std=0.02, dtype=jnp.float32):
        return (std * jax.random.normal(k, shape)).astype(dtype)

    keys = iter(jax.random.split(key, 3 + 12 * n_layers))
    params = {
        'token_embed': nrm(next(keys), (V, D)),
        'pos_embed': nrm(next(keys), (C, D)),
        'ln_f_scale': jnp.ones((D,), jnp.float32),
        'ln_f_shift': jnp.zeros((D,), jnp.float32),
        'lm_head': nrm(next(keys), (D, V), dtype=jnp.bfloat16),   # bias=False
        'blocks': [],
    }
    for _ in range(n_layers):
        blk = {
            'ln1_scale': jnp.ones((D,), jnp.float32),
            'ln1_shift': jnp.zeros((D,), jnp.float32),
            'ln2_scale': jnp.ones((D,), jnp.float32),
            'ln2_shift': jnp.zeros((D,), jnp.float32),
            'w_q': nrm(next(keys), (D, D), dtype=jnp.bfloat16),
            'w_k': nrm(next(keys), (D, D), dtype=jnp.bfloat16),
            'w_v': nrm(next(keys), (D, D), dtype=jnp.bfloat16),
            'b_q': nrm(next(keys), (D,)) if qkv_bias else None,
            'b_k': nrm(next(keys), (D,)) if qkv_bias else None,
            'b_v': nrm(next(keys), (D,)) if qkv_bias else None,
            'wo': nrm(next(keys), (D, D), dtype=jnp.bfloat16),
            'bo': nrm(next(keys), (D,)),
            'w1': nrm(next(keys), (D, H4), dtype=jnp.bfloat16),
            'b1': nrm(next(keys), (H4,)),
            'w2': nrm(next(keys), (H4, D), dtype=jnp.bfloat16),
            'b2': nrm(next(keys), (D,)),
        }
        params['blocks'].append(blk)
    return params


# ----------------------------------------------------------------------------
# Forward pass
# ----------------------------------------------------------------------------
def gpt_forward(params, config, text_ids):
    assert text_ids.ndim == 2
    B, S = text_ids.shape
    D = config['emb_dim']
    H = config['n_heads']
    V = config['vocab_size']

    # TODO(synk): token/positional embedding lookup kept in plain JAX
    # (data-dependent gather).
    x = params['token_embed'][text_ids] + params['pos_embed'][:S][None, :, :]
    x2d = x.astype(jnp.float32).reshape(B * S, D)    # residual stream (f32)

    for blk in params['blocks']:
        # --- attention sub-block ---
        h1 = layernorm(x2d, blk['ln1_scale'], blk['ln1_shift'])        # bf16
        q = linear(h1, blk['w_q'], blk['b_q'], out_dtype=jnp.bfloat16)
        k = linear(h1, blk['w_k'], blk['b_k'], out_dtype=jnp.bfloat16)
        v = linear(h1, blk['w_v'], blk['b_v'], out_dtype=jnp.bfloat16)
        # reshapes only split/merge leading dims -> free, no transposes
        ctx = flash_causal_attention(q.reshape(B, S, D), k.reshape(B, S, D),
                                     v.reshape(B, S, D), H)
        ctx2d = ctx.reshape(B * S, D)                                  # bf16
        # out-proj + residual add fused (dropout -> identity)
        x2d = linear(ctx2d, blk['wo'], blk['bo'], residual=x2d,
                     out_dtype=jnp.float32)                            # x1

        # --- FFN sub-block: Linear -> GELU -> Linear -> GELU (per spec) ---
        h2 = layernorm(x2d, blk['ln2_scale'], blk['ln2_shift'])        # bf16
        f = linear(h2, blk['w1'], blk['b1'], activation='gelu',
                   out_dtype=jnp.bfloat16)
        x2d = linear(f, blk['w2'], blk['b2'], activation='gelu',
                     residual=x2d, out_dtype=jnp.float32)              # x2 + x1

    hf = layernorm(x2d, params['ln_f_scale'], params['ln_f_shift'])    # bf16
    logits = linear(hf, params['lm_head'], None, out_dtype=jnp.float32)
    return logits.reshape(B, S, V)


# ----------------------------------------------------------------------------
if __name__ == "__main__":
    config = {
        'vocab_size': 64,
        'emb_dim': 32,
        'context_length': 16,
        'n_heads': 4,
        'n_layers': 2,
        'qkv_bias': True,
        'mha_drop_rate': 0.0,
        'trf_drop_rate': 0.0,
        'gpt_drop_rate': 0.0,
    }

    key = jax.random.PRNGKey(0)
    pkey, ikey = jax.random.split(key)
    params = init_params(pkey, config)

    B, S = 2, 8
    text_ids = jax.random.randint(ikey, (B, S), 0, config['vocab_size'],
                                  dtype=jnp.int32)

    logits = jax.jit(functools.partial(gpt_forward, params, config))(text_ids)
    logits = jax.block_until_ready(logits)

    assert logits.shape == (B, S, config['vocab_size'])
    assert bool(jnp.all(jnp.isfinite(logits)))
    print("KERNEL_OK")
</pallas_src>

<mosaic_0001>
module attributes {stable_mosaic.version = 11 : i64} {
  func.func @_layernorm_kernel(%arg0: i32, %arg1: memref<16x32xf32, #tpu.memory_space<vmem>>, %arg2: memref<1x32xf32, #tpu.memory_space<vmem>>, %arg3: memref<1x32xf32, #tpu.memory_space<vmem>>, %arg4: memref<16x32xbf16, #tpu.memory_space<vmem>>) attributes {dimension_semantics = [#tpu.dimension_semantics<parallel>], iteration_bounds = array<i64: 1>, scalar_prefetch = 0 : i64, scratch_operands = 0 : i64, tpu.core_type = #tpu.core_type<tc>, window_params = [{transform_indices = @transform_0, window_bounds = array<i64: 16, 32>}, {pipeline_mode = #tpu.pipeline_mode<synchronous>, transform_indices = @transform_1, window_bounds = array<i64: 1, 32>}, {pipeline_mode = #tpu.pipeline_mode<synchronous>, transform_indices = @transform_2, window_bounds = array<i64: 1, 32>}, {transform_indices = @transform_3, window_bounds = array<i64: 16, 32>}]} {
    %c0 = arith.constant 0 : index
    %c0_0 = arith.constant 0 : index
    %0 = vector.load %arg1[%c0, %c0_0] : memref<16x32xf32, #tpu.memory_space<vmem>>, vector<16x32xf32>
    %cst = arith.constant dense<0.000000e+00> : vector<16xf32>
    %1 = vector.multi_reduction <add>, %0, %cst [1] : vector<16x32xf32> to vector<16xf32>
    %2 = vector.shape_cast %1 : vector<16xf32> to vector<16x1xf32>
    %cst_1 = arith.constant 3.200000e+01 : f32
    %3 = vector.broadcast %cst_1 : f32 to vector<16x1xf32>
    %4 = arith.divf %2, %3 : vector<16x1xf32>
    %5 = vector.broadcast %4 : vector<16x1xf32> to vector<16x32xf32>
    %6 = arith.subf %0, %5 : vector<16x32xf32>
    %7 = arith.mulf %6, %6 : vector<16x32xf32>
    %cst_2 = arith.constant dense<0.000000e+00> : vector<16xf32>
    %8 = vector.multi_reduction <add>, %7, %cst_2 [1] : vector<16x32xf32> to vector<16xf32>
    %9 = vector.shape_cast %8 : vector<16xf32> to vector<16x1xf32>
    %cst_3 = arith.constant 3.200000e+01 : f32
    %10 = vector.broadcast %cst_3 : f32 to vector<16x1xf32>
    %11 = arith.divf %9, %10 : vector<16x1xf32>
    %cst_4 = arith.constant 9.99999974E-6 : f32
    %12 = vector.broadcast %cst_4 : f32 to vector<16x1xf32>
    %13 = arith.addf %11, %12 : vector<16x1xf32>
    %14 = math.rsqrt %13 : vector<16x1xf32>
    %c0_5 = arith.constant 0 : index
    %c0_6 = arith.constant 0 : index
    %15 = vector.load %arg2[%c0_5, %c0_6] : memref<1x32xf32, #tpu.memory_space<vmem>>, vector<1x32xf32>
    %16 = vector.broadcast %4 : vector<16x1xf32> to vector<16x32xf32>
    %17 = arith.subf %0, %16 : vector<16x32xf32>
    %18 = vector.broadcast %14 : vector<16x1xf32> to vector<16x32xf32>
    %19 = arith.mulf %17, %18 : vector<16x32xf32>
    %20 = vector.broadcast %15 : vector<1x32xf32> to vector<16x32xf32>
    %21 = arith.mulf %20, %19 : vector<16x32xf32>
    %c0_7 = arith.constant 0 : index
    %c0_8 = arith.constant 0 : index
    %22 = vector.load %arg3[%c0_7, %c0_8] : memref<1x32xf32, #tpu.memory_space<vmem>>, vector<1x32xf32>
    %23 = vector.broadcast %22 : vector<1x32xf32> to vector<16x32xf32>
    %24 = arith.addf %21, %23 : vector<16x32xf32>
    %25 = arith.truncf %24 : vector<16x32xf32> to vector<16x32xbf16>
    %c0_9 = arith.constant 0 : index
    %c0_10 = arith.constant 0 : index
    %26 = vector.load %arg4[%c0_9, %c0_10] : memref<16x32xbf16, #tpu.memory_space<vmem>>, vector<16x32xbf16>
    tpu.vector_store %arg4[%c0_9, %c0_10], %25 {strides = array<i32>} : memref<16x32xbf16, #tpu.memory_space<vmem>>, vector<16x32xbf16>,
    return
  }
  func.func @transform_0(%arg0: i32) -> (i32, i32) {
    %c0_i32 = arith.constant 0 : i32
    %c0_i32_0 = arith.constant 0 : i32
    return %arg0, %c0_i32 : i32, i32
  }
  func.func @transform_1(%arg0: i32) -> (i32, i32) {
    %c0_i32 = arith.constant 0 : i32
    %c0_i32_0 = arith.constant 0 : i32
    %c0_i32_1 = arith.constant 0 : i32
    return %c0_i32, %c0_i32_0 : i32, i32
  }
  func.func @transform_2(%arg0: i32) -> (i32, i32) {
    %c0_i32 = arith.constant 0 : i32
    %c0_i32_0 = arith.constant 0 : i32
    %c0_i32_1 = arith.constant 0 : i32
    return %c0_i32, %c0_i32_0 : i32, i32
  }
  func.func @transform_3(%arg0: i32) -> (i32, i32) {
    %c0_i32 = arith.constant 0 : i32
    %c0_i32_0 = arith.constant 0 : i32
    return %arg0, %c0_i32 : i32, i32
  }
}

module attributes {stable_mosaic.version = 11 : i64} {
  func.func @_linear_kernel(%arg0: i32, %arg1: i32, %arg2: i32, %arg3: memref<16x32xbf16, #tpu.memory_space<vmem>>, %arg4: memref<32x32xbf16, #tpu.memory_space<vmem>>, %arg5: memref<1x32xf32, #tpu.memory_space<vmem>>, %arg6: memref<16x32xbf16, #tpu.memory_space<vmem>>, %arg7: memref<16x32xf32, #tpu.memory_space<vmem>>) attributes {dimension_semantics = [#tpu.dimension_semantics<parallel>, #tpu.dimension_semantics<parallel>, #tpu.dimension_semantics<arbitrary>], iteration_bounds = array<i64: 1, 1, 1>, scalar_prefetch = 0 : i64, scratch_operands = 1 : i64, tpu.core_type = #tpu.core_type<tc>, window_params = [{transform_indices = @transform_0, window_bounds = array<i64: 16, 32>}, {transform_indices = @transform_1, window_bounds = array<i64: 32, 32>}, {transform_indices = @transform_2, window_bounds = array<i64: 1, 32>}, {transform_indices = @transform_3, window_bounds = array<i64: 16, 32>}]} {
    %c0_i32 = arith.constant 0 : i32
    %0 = arith.cmpi eq, %arg2, %c0_i32 : i32
    %1 = arith.extui %0 : i1 to i32
    %c0_i32_0 = arith.constant 0 : i32
    %2 = arith.cmpi ne, %1, %c0_i32_0 : i32
    scf.if %2 {
      %cst_10 = arith.constant 0.000000e+00 : f32
      %12 = vector.broadcast %cst_10 : f32 to vector<16x32xf32>
      %c0_11 = arith.constant 0 : index
      %c0_12 = arith.constant 0 : index
      %13 = vector.load %arg7[%c0_11, %c0_12] : memref<16x32xf32, #tpu.memory_space<vmem>>, vector<16x32xf32>
      tpu.vector_store %arg7[%c0_11, %c0_12], %12 {strides = array<i32>} : memref<16x32xf32, #tpu.memory_space<vmem>>, vector<16x32xf32>,
    } else {
    }
    %c0 = arith.constant 0 : index
    %c0_1 = arith.constant 0 : index
    %3 = vector.load %arg7[%c0, %c0_1] : memref<16x32xf32, #tpu.memory_space<vmem>>, vector<16x32xf32>
    %c0_2 = arith.constant 0 : index
    %c0_3 = arith.constant 0 : index
    %4 = vector.load %arg3[%c0_2, %c0_3] : memref<16x32xbf16, #tpu.memory_space<vmem>>, vector<16x32xbf16>
    %c0_4 = arith.constant 0 : index
    %c0_5 = arith.constant 0 : index
    %5 = vector.load %arg4[%c0_4, %c0_5] : memref<32x32xbf16, #tpu.memory_space<vmem>>, vector<32x32xbf16>
    %cst = arith.constant dense<0.000000e+00> : vector<16x32xf32>
    %6 = tpu.matmul %4, %5, %cst {dimension_numbers = #tpu.dot_dimension_numbers<[1], [0], [0], [1], [0, 0, 1, 1], [], []>} : vector<16x32xbf16>, vector<32x32xbf16>, vector<16x32xf32> -> vector<16x32xf32>
    %7 = arith.addf %3, %6 : vector<16x32xf32>
    %c0_6 = arith.constant 0 : index
    %c0_7 = arith.constant 0 : index
    %8 = vector.load %arg7[%c0_6, %c0_7] : memref<16x32xf32, #tpu.memory_space<vmem>>, vector<16x32xf32>
    tpu.vector_store %arg7[%c0_6, %c0_7], %7 {strides = array<i32>} : memref<16x32xf32, #tpu.memory_space<vmem>>, vector<16x32xf32>,
    %c0_i32_8 = arith.constant 0 : i32
    %9 = arith.cmpi eq, %arg2, %c0_i32_8 : i32
    %10 = arith.extui %9 : i1 to i32
    %c0_i32_9 = arith.constant 0 : i32
    %11 = arith.cmpi ne, %10, %c0_i32_9 : i32
    scf.if %11 {
      %c0_10 = arith.constant 0 : index
      %c0_11 = arith.constant 0 : index
      %12 = vector.load %arg7[%c0_10, %c0_11] : memref<16x32xf32, #tpu.memory_space<vmem>>, vector<16x32xf32>
      %c0_12 = arith.constant 0 : index
      %c0_13 = arith.constant 0 : index
      %13 = vector.load %arg5[%c0_12, %c0_13] : memref<1x32xf32, #tpu.memory_space<vmem>>, vector<1x32xf32>
      %14 = vector.broadcast %13 : vector<1x32xf32> to vector<16x32xf32>
      %15 = arith.addf %12, %14 : vector<16x32xf32>
      %16 = arith.truncf %15 : vector<16x32xf32> to vector<16x32xbf16>
      %c0_14 = arith.constant 0 : index
      %c0_15 = arith.constant 0 : index
      %17 = vector.load %arg6[%c0_14, %c0_15] : memref<16x32xbf16, #tpu.memory_space<vmem>>, vector<16x32xbf16>
      tpu.vector_store %arg6[%c0_14, %c0_15], %16 {strides = array<i32>} : memref<16x32xbf16, #tpu.memory_space<vmem>>, vector<16x32xbf16>,
    } else {
    }
    return
  }
  func.func @transform_0(%arg0: i32, %arg1: i32, %arg2: i32) -> (i32, i32) {
    %c0_i32 = arith.constant 0 : i32
    return %arg0, %arg2 : i32, i32
  }
  func.func @transform_1(%arg0: i32, %arg1: i32, %arg2: i32) -> (i32, i32) {
    %c0_i32 = arith.constant 0 : i32
    return %arg2, %arg1 : i32, i32
  }
  func.func @transform_2(%arg0: i32, %arg1: i32, %arg2: i32) -> (i32, i32) {
    %c0_i32 = arith.constant 0 : i32
    %c0_i32_0 = arith.constant 0 : i32
    return %c0_i32, %arg1 : i32, i32
  }
  func.func @transform_3(%arg0: i32, %arg1: i32, %arg2: i32) -> (i32, i32) {
    %c0_i32 = arith.constant 0 : i32
    return %arg0, %arg1 : i32, i32
  }
}

module attributes {stable_mosaic.version = 11 : i64} {
  func.func @_linear_kernel(%arg0: i32, %arg1: i32, %arg2: i32, %arg3: memref<16x32xbf16, #tpu.memory_space<vmem>>, %arg4: memref<32x32xbf16, #tpu.memory_space<vmem>>, %arg5: memref<1x32xf32, #tpu.memory_space<vmem>>, %arg6: memref<16x32xf32, #tpu.memory_space<vmem>>, %arg7: memref<16x32xf32, #tpu.memory_space<vmem>>, %arg8: memref<16x32xf32, #tpu.memory_space<vmem>>) attributes {dimension_semantics = [#tpu.dimension_semantics<parallel>, #tpu.dimension_semantics<parallel>, #tpu.dimension_semantics<arbitrary>], iteration_bounds = array<i64: 1, 1, 1>, scalar_prefetch = 0 : i64, scratch_operands = 1 : i64, tpu.core_type = #tpu.core_type<tc>, window_params = [{transform_indices = @transform_0, window_bounds = array<i64: 16, 32>}, {transform_indices = @transform_1, window_bounds = array<i64: 32, 32>}, {transform_indices = @transform_2, window_bounds = array<i64: 1, 32>}, {transform_indices = @transform_3, window_bounds = array<i64: 16, 32>}, {transform_indices = @transform_4, window_bounds = array<i64: 16, 32>}]} {
    %c0_i32 = arith.constant 0 : i32
    %0 = arith.cmpi eq, %arg2, %c0_i32 : i32
    %1 = arith.extui %0 : i1 to i32
    %c0_i32_0 = arith.constant 0 : i32
    %2 = arith.cmpi ne, %1, %c0_i32_0 : i32
    scf.if %2 {
      %cst_10 = arith.constant 0.000000e+00 : f32
      %12 = vector.broadcast %cst_10 : f32 to vector<16x32xf32>
      %c0_11 = arith.constant 0 : index
      %c0_12 = arith.constant 0 : index
      %13 = vector.load %arg8[%c0_11, %c0_12] : memref<16x32xf32, #tpu.memory_space<vmem>>, vector<16x32xf32>
      tpu.vector_store %arg8[%c0_11, %c0_12], %12 {strides = array<i32>} : memref<16x32xf32, #tpu.memory_space<vmem>>, vector<16x32xf32>,
    } else {
    }
    %c0 = arith.constant 0 : index
    %c0_1 = arith.constant 0 : index
    %3 = vector.load %arg8[%c0, %c0_1] : memref<16x32xf32, #tpu.memory_space<vmem>>, vector<16x32xf32>
    %c0_2 = arith.constant 0 : index
    %c0_3 = arith.constant 0 : index
    %4 = vector.load %arg3[%c0_2, %c0_3] : memref<16x32xbf16, #tpu.memory_space<vmem>>, vector<16x32xbf16>
    %c0_4 = arith.constant 0 : index
    %c0_5 = arith.constant 0 : index
    %5 = vector.load %arg4[%c0_4, %c0_5] : memref<32x32xbf16, #tpu.memory_space<vmem>>, vector<32x32xbf16>
    %cst = arith.constant dense<0.000000e+00> : vector<16x32xf32>
    %6 = tpu.matmul %4, %5, %cst {dimension_numbers = #tpu.dot_dimension_numbers<[1], [0], [0], [1], [0, 0, 1, 1], [], []>} : vector<16x32xbf16>, vector<32x32xbf16>, vector<16x32xf32> -> vector<16x32xf32>
    %7 = arith.addf %3, %6 : vector<16x32xf32>
    %c0_6 = arith.constant 0 : index
    %c0_7 = arith.constant 0 : index
    %8 = vector.load %arg8[%c0_6, %c0_7] : memref<16x32xf32, #tpu.memory_space<vmem>>, vector<16x32xf32>
    tpu.vector_store %arg8[%c0_6, %c0_7], %7 {strides = array<i32>} : memref<16x32xf32, #tpu.memory_space<vmem>>, vector<16x32xf32>,
    %c0_i32_8 = arith.constant 0 : i32
    %9 = arith.cmpi eq, %arg2, %c0_i32_8 : i32
    %10 = arith.extui %9 : i1 to i32
    %c0_i32_9 = arith.constant 0 : i32
    %11 = arith.cmpi ne, %10, %c0_i32_9 : i32
    scf.if %11 {
      %c0_10 = arith.constant 0 : index
      %c0_11 = arith.constant 0 : index
      %12 = vector.load %arg8[%c0_10, %c0_11] : memref<16x32xf32, #tpu.memory_space<vmem>>, vector<16x32xf32>
      %c0_12 = arith.constant 0 : index
      %c0_13 = arith.constant 0 : index
      %13 = vector.load %arg5[%c0_12, %c0_13] : memref<1x32xf32, #tpu.memory_space<vmem>>, vector<1x32xf32>
      %14 = vector.broadcast %13 : vector<1x32xf32> to vector<16x32xf32>
      %15 = arith.addf %12, %14 : vector<16x32xf32>
      %c0_14 = arith.constant 0 : index
      %c0_15 = arith.constant 0 : index
      %16 = vector.load %arg6[%c0_14, %c0_15] : memref<16x32xf32, #tpu.memory_space<vmem>>, vector<16x32xf32>
      %17 = arith.addf %15, %16 : vector<16x32xf32>
      %c0_16 = arith.constant 0 : index
      %c0_17 = arith.constant 0 : index
      %18 = vector.load %arg7[%c0_16, %c0_17] : memref<16x32xf32, #tpu.memory_space<vmem>>, vector<16x32xf32>
      tpu.vector_store %arg7[%c0_16, %c0_17], %17 {strides = array<i32>} : memref<16x32xf32, #tpu.memory_space<vmem>>, vector<16x32xf32>,
    } else {
    }
    return
  }
  func.func @transform_0(%arg0: i32, %arg1: i32, %arg2: i32) -> (i32, i32) {
    %c0_i32 = arith.constant 0 : i32
    return %arg0, %arg2 : i32, i32
  }
  func.func @transform_1(%arg0: i32, %arg1: i32, %arg2: i32) -> (i32, i32) {
    %c0_i32 = arith.constant 0 : i32
    return %arg2, %arg1 : i32, i32
  }
  func.func @transform_2(%arg0: i32, %arg1: i32, %arg2: i32) -> (i32, i32) {
    %c0_i32 = arith.constant 0 : i32
    %c0_i32_0 = arith.constant 0 : i32
    return %c0_i32, %arg1 : i32, i32
  }
  func.func @transform_3(%arg0: i32, %arg1: i32, %arg2: i32) -> (i32, i32) {
    %c0_i32 = arith.constant 0 : i32
    return %arg0, %arg1 : i32, i32
  }
  func.func @transform_4(%arg0: i32, %arg1: i32, %arg2: i32) -> (i32, i32) {
    %c0_i32 = arith.constant 0 : i32
    return %arg0, %arg1 : i32, i32
  }
}

module attributes {stable_mosaic.version = 11 : i64} {
  func.func @_flash_attn_kernel(%arg0: i32, %arg1: i32, %arg2: i32, %arg3: memref<1x8x32xbf16, #tpu.memory_space<vmem>>, %arg4: memref<1x8x32xbf16, #tpu.memory_space<vmem>>, %arg5: memref<1x8x32xbf16, #tpu.memory_space<vmem>>, %arg6: memref<1x8x32xbf16, #tpu.memory_space<vmem>>, %arg7: memref<4x8x1xf32, #tpu.memory_space<vmem>>, %arg8: memref<4x8x1xf32, #tpu.memory_space<vmem>>, %arg9: memref<4x8x8xf32, #tpu.memory_space<vmem>>) attributes {dimension_semantics = [#tpu.dimension_semantics<parallel>, #tpu.dimension_semantics<parallel>, #tpu.dimension_semantics<arbitrary>], iteration_bounds = array<i64: 2, 1, 1>, scalar_prefetch = 0 : i64, scratch_operands = 3 : i64, tpu.core_type = #tpu.core_type<tc>, window_params = [{transform_indices = @transform_0, window_bounds = array<i64: 1, 8, 32>}, {transform_indices = @transform_1, window_bounds = array<i64: 1, 8, 32>}, {transform_indices = @transform_2, window_bounds = array<i64: 1, 8, 32>}, {transform_indices = @transform_3, window_bounds = array<i64: 1, 8, 32>}]} {
    %c0_i32 = arith.constant 0 : i32
    %0 = arith.cmpi eq, %arg2, %c0_i32 : i32
    %1 = arith.extui %0 : i1 to i32
    %c0_i32_0 = arith.constant 0 : i32
    %2 = arith.cmpi ne, %1, %c0_i32_0 : i32
    scf.if %2 {
      %cst = arith.constant -1.000000e+30 : f32
      %19 = vector.broadcast %cst : f32 to vector<4x8x1xf32>
      %c0 = arith.constant 0 : index
      %c0_7 = arith.constant 0 : index
      %c0_8 = arith.constant 0 : index
      %20 = vector.load %arg7[%c0, %c0_7, %c0_8] : memref<4x8x1xf32, #tpu.memory_space<vmem>>, vector<4x8x1xf32>
      tpu.vector_store %arg7[%c0, %c0_7, %c0_8], %19 {strides = array<i32>} : memref<4x8x1xf32, #tpu.memory_space<vmem>>, vector<4x8x1xf32>,
      %cst_9 = arith.constant 0.000000e+00 : f32
      %21 = vector.broadcast %cst_9 : f32 to vector<4x8x1xf32>
      %c0_10 = arith.constant 0 : index
      %c0_11 = arith.constant 0 : index
      %c0_12 = arith.constant 0 : index
      %22 = vector.load %arg8[%c0_10, %c0_11, %c0_12] : memref<4x8x1xf32, #tpu.memory_space<vmem>>, vector<4x8x1xf32>
      tpu.vector_store %arg8[%c0_10, %c0_11, %c0_12], %21 {strides = array<i32>} : memref<4x8x1xf32, #tpu.memory_space<vmem>>, vector<4x8x1xf32>,
      %cst_13 = arith.constant 0.000000e+00 : f32
      %23 = vector.broadcast %cst_13 : f32 to vector<4x8x8xf32>
      %c0_14 = arith.constant 0 : index
      %c0_15 = arith.constant 0 : index
      %c0_16 = arith.constant 0 : index
      %24 = vector.load %arg9[%c0_14, %c0_15, %c0_16] : memref<4x8x8xf32, #tpu.memory_space<vmem>>, vector<4x8x8xf32>
      tpu.vector_store %arg9[%c0_14, %c0_15, %c0_16], %23 {strides = array<i32>} : memref<4x8x8xf32, #tpu.memory_space<vmem>>, vector<4x8x8xf32>,
    } else {
    }
    %c8_i32 = arith.constant 8 : i32
    %3 = arith.muli %arg1, %c8_i32 : i32
    %c8_i32_1 = arith.constant 8 : i32
    %4 = arith.muli %arg2, %c8_i32_1 : i32
    %c7_i32 = arith.constant 7 : i32
    %5 = arith.addi %3, %c7_i32 : i32
    %6 = arith.cmpi sle, %4, %5 : i32
    %c7_i32_2 = arith.constant 7 : i32
    %7 = arith.addi %4, %c7_i32_2 : i32
    %8 = arith.cmpi sle, %7, %3 : i32
    %9 = arith.andi %6, %8 : i1
    %10 = arith.extui %9 : i1 to i32
    %c0_i32_3 = arith.constant 0 : i32
    %11 = arith.cmpi ne, %10, %c0_i32_3 : i32
    scf.if %11 {
      %c0 = arith.constant 0 : index
      %c0_7 = arith.constant 0 : index
      %c0_8 = arith.constant 0 : index
      %19 = vector.load %arg3[%c0, %c0_7, %c0_8] : memref<1x8x32xbf16, #tpu.memory_space<vmem>>, vector<1x8x32xbf16>
      %20 = vector.shape_cast %19 : vector<1x8x32xbf16> to vector<8x32xbf16>
      %c0_9 = arith.constant 0 : index
      %c0_10 = arith.constant 0 : index
      %c0_11 = arith.constant 0 : index
      %21 = vector.load %arg4[%c0_9, %c0_10, %c0_11] : memref<1x8x32xbf16, #tpu.memory_space<vmem>>, vector<1x8x32xbf16>
      %22 = vector.shape_cast %21 : vector<1x8x32xbf16> to vector<8x32xbf16>
      %c0_12 = arith.constant 0 : index
      %c0_13 = arith.constant 0 : index
      %c0_14 = arith.constant 0 : index
      %23 = vector.load %arg5[%c0_12, %c0_13, %c0_14] : memref<1x8x32xbf16, #tpu.memory_space<vmem>>, vector<1x8x32xbf16>
      %24 = vector.shape_cast %23 : vector<1x8x32xbf16> to vector<8x32xbf16>
      %25 = vector.extract_strided_slice %20 {offsets = [0, 0], sizes = [8, 8], strides = [1, 1]} : vector<8x32xbf16> to vector<8x8xbf16>
      %cst = arith.constant 3.535160e-01 : bf16
      %26 = vector.broadcast %cst : bf16 to vector<8x8xbf16>
      %27 = arith.mulf %25, %26 : vector<8x8xbf16>
      %28 = vector.extract_strided_slice %22 {offsets = [0, 0], sizes = [8, 8], strides = [1, 1]} : vector<8x32xbf16> to vector<8x8xbf16>
      %cst_15 = arith.constant dense<0.000000e+00> : vector<8x8xf32>
      %29 = tpu.matmul %27, %28, %cst_15 {dimension_numbers = #tpu.dot_dimension_numbers<[1], [1], [0], [0], [0, 0, 1, 0], [], []>} : vector<8x8xbf16>, vector<8x8xbf16>, vector<8x8xf32> -> vector<8x8xf32>
      %c0_16 = arith.constant 0 : index
      %c0_17 = arith.constant 0 : index
      %c0_18 = arith.constant 0 : index
      %30 = vector.load %arg7[%c0_16, %c0_17, %c0_18] : memref<4x8x1xf32, #tpu.memory_space<vmem>>, vector<1x8x1xf32>
      %31 = vector.shape_cast %30 : vector<1x8x1xf32> to vector<8x1xf32>
      %cst_19 = arith.constant dense<0xFF800000> : vector<8xf32>
      %32 = vector.multi_reduction <maximumf>, %29, %cst_19 [1] : vector<8x8xf32> to vector<8xf32>
      %33 = vector.shape_cast %32 : vector<8xf32> to vector<8x1xf32>
      %34 = arith.maximumf %31, %33 : vector<8x1xf32>
      %35 = arith.subf %31, %34 : vector<8x1xf32>
      %36 = math.exp %35 : vector<8x1xf32>
      %37 = vector.broadcast %34 : vector<8x1xf32> to vector<8x8xf32>
      %38 = arith.subf %29, %37 : vector<8x8xf32>
      %39 = math.exp %38 : vector<8x8xf32>
      %c0_20 = arith.constant 0 : index
      %c0_21 = arith.constant 0 : index
      %c0_22 = arith.constant 0 : index
      %40 = vector.load %arg8[%c0_20, %c0_21, %c0_22] : memref<4x8x1xf32, #tpu.memory_space<vmem>>, vector<1x8x1xf32>
      %41 = vector.shape_cast %40 : vector<1x8x1xf32> to vector<8x1xf32>
      %42 = arith.mulf %36, %41 : vector<8x1xf32>
      %cst_23 = arith.constant dense<0.000000e+00> : vector<8xf32>
      %43 = vector.multi_reduction <add>, %39, %cst_23 [1] : vector<8x8xf32> to vector<8xf32>
      %44 = vector.shape_cast %43 : vector<8xf32> to vector<8x1xf32>
      %45 = arith.addf %42, %44 : vector<8x1xf32>
      %c0_24 = arith.constant 0 : index
      %c0_25 = arith.constant 0 : index
      %c0_26 = arith.constant 0 : index
      %46 = vector.load %arg8[%c0_24, %c0_25, %c0_26] : memref<4x8x1xf32, #tpu.memory_space<vmem>>, vector<1x8x1xf32>
      %47 = vector.shape_cast %46 : vector<1x8x1xf32> to vector<8x1xf32>
      %48 = vector.shape_cast %45 : vector<8x1xf32> to vector<1x8x1xf32>
      tpu.vector_store %arg8[%c0_24, %c0_25, %c0_26], %48 {strides = array<i32>} : memref<4x8x1xf32, #tpu.memory_space<vmem>>, vector<1x8x1xf32>,
      %c0_27 = arith.constant 0 : index
      %c0_28 = arith.constant 0 : index
      %c0_29 = arith.constant 0 : index
      %49 = vector.load %arg9[%c0_27, %c0_28, %c0_29] : memref<4x8x8xf32, #tpu.memory_space<vmem>>, vector<1x8x8xf32>
      %50 = vector.shape_cast %49 : vector<1x8x8xf32> to vector<8x8xf32>
      %51 = vector.broadcast %36 : vector<8x1xf32> to vector<8x8xf32>
      %52 = arith.mulf %51, %50 : vector<8x8xf32>
      %53 = arith.truncf %39 : vector<8x8xf32> to vector<8x8xbf16>
      %54 = vector.extract_strided_slice %24 {offsets = [0, 0], sizes = [8, 8], strides = [1, 1]} : vector<8x32xbf16> to vector<8x8xbf16>
      %cst_30 = arith.constant dense<0.000000e+00> : vector<8x8xf32>
      %55 = tpu.matmul %53, %54, %cst_30 {dimension_numbers = #tpu.dot_dimension_numbers<[1], [0], [0], [1], [0, 0, 1, 1], [], []>} : vector<8x8xbf16>, vector<8x8xbf16>, vector<8x8xf32> -> vector<8x8xf32>
      %56 = arith.addf %52, %55 : vector<8x8xf32>
      %c0_31 = arith.constant 0 : index
      %c0_32 = arith.constant 0 : index
      %c0_33 = arith.constant 0 : index
      %57 = vector.load %arg9[%c0_31, %c0_32, %c0_33] : memref<4x8x8xf32, #tpu.memory_space<vmem>>, vector<1x8x8xf32>
      %58 = vector.shape_cast %57 : vector<1x8x8xf32> to vector<8x8xf32>
      %59 = vector.shape_cast %56 : vector<8x8xf32> to vector<1x8x8xf32>
      tpu.vector_store %arg9[%c0_31, %c0_32, %c0_33], %59 {strides = array<i32>} : memref<4x8x8xf32, #tpu.memory_space<vmem>>, vector<1x8x8xf32>,
      %c0_34 = arith.constant 0 : index
      %c0_35 = arith.constant 0 : index
      %c0_36 = arith.constant 0 : index
      %60 = vector.load %arg7[%c0_34, %c0_35, %c0_36] : memref<4x8x1xf32, #tpu.memory_space<vmem>>, vector<1x8x1xf32>
      %61 = vector.shape_cast %60 : vector<1x8x1xf32> to vector<8x1xf32>
      %62 = vector.shape_cast %34 : vector<8x1xf32> to vector<1x8x1xf32>
      tpu.vector_store %arg7[%c0_34, %c0_35, %c0_36], %62 {strides = array<i32>} : memref<4x8x1xf32, #tpu.memory_space<vmem>>, vector<1x8x1xf32>,
      %63 = vector.extract_strided_slice %20 {offsets = [0, 8], sizes = [8, 8], strides = [1, 1]} : vector<8x32xbf16> to vector<8x8xbf16>
      %cst_37 = arith.constant 3.535160e-01 : bf16
      %64 = vector.broadcast %cst_37 : bf16 to vector<8x8xbf16>
      %65 = arith.mulf %63, %64 : vector<8x8xbf16>
      %66 = vector.extract_strided_slice %22 {offsets = [0, 8], sizes = [8, 8], strides = [1, 1]} : vector<8x32xbf16> to vector<8x8xbf16>
      %cst_38 = arith.constant dense<0.000000e+00> : vector<8x8xf32>
      %67 = tpu.matmul %65, %66, %cst_38 {dimension_numbers = #tpu.dot_dimension_numbers<[1], [1], [0], [0], [0, 0, 1, 0], [], []>} : vector<8x8xbf16>, vector<8x8xbf16>, vector<8x8xf32> -> vector<8x8xf32>
      %c1 = arith.constant 1 : index
      %c0_39 = arith.constant 0 : index
      %c0_40 = arith.constant 0 : index
      %68 = vector.load %arg7[%c1, %c0_39, %c0_40] : memref<4x8x1xf32, #tpu.memory_space<vmem>>, vector<1x8x1xf32>
      %69 = vector.shape_cast %68 : vector<1x8x1xf32> to vector<8x1xf32>
      %cst_41 = arith.constant dense<0xFF800000> : vector<8xf32>
      %70 = vector.multi_reduction <maximumf>, %67, %cst_41 [1] : vector<8x8xf32> to vector<8xf32>
      %71 = vector.shape_cast %70 : vector<8xf32> to vector<8x1xf32>
      %72 = arith.maximumf %69, %71 : vector<8x1xf32>
      %73 = arith.subf %69, %72 : vector<8x1xf32>
      %74 = math.exp %73 : vector<8x1xf32>
      %75 = vector.broadcast %72 : vector<8x1xf32> to vector<8x8xf32>
      %76 = arith.subf %67, %75 : vector<8x8xf32>
      %77 = math.exp %76 : vector<8x8xf32>
      %c1_42 = arith.constant 1 : index
      %c0_43 = arith.constant 0 : index
      %c0_44 = arith.constant 0 : index
      %78 = vector.load %arg8[%c1_42, %c0_43, %c0_44] : memref<4x8x1xf32, #tpu.memory_space<vmem>>, vector<1x8x1xf32>
      %79 = vector.shape_cast %78 : vector<1x8x1xf32> to vector<8x1xf32>
      %80 = arith.mulf %74, %79 : vector<8x1xf32>
      %cst_45 = arith.constant dense<0.000000e+00> : vector<8xf32>
      %81 = vector.multi_reduction <add>, %77, %cst_45 [1] : vector<8x8xf32> to vector<8xf32>
      %82 = vector.shape_cast %81 : vector<8xf32> to vector<8x1xf32>
      %83 = arith.addf %80, %82 : vector<8x1xf32>
      %c1_46 = arith.constant 1 : index
      %c0_47 = arith.constant 0 : index
      %c0_48 = arith.constant 0 : index
      %84 = vector.load %arg8[%c1_46, %c0_47, %c0_48] : memref<4x8x1xf32, #tpu.memory_space<vmem>>, vector<1x8x1xf32>
      %85 = vector.shape_cast %84 : vector<1x8x1xf32> to vector<8x1xf32>
      %86 = vector.shape_cast %83 : vector<8x1xf32> to vector<1x8x1xf32>
      tpu.vector_store %arg8[%c1_46, %c0_47, %c0_48], %86 {strides = array<i32>} : memref<4x8x1xf32, #tpu.memory_space<vmem>>, vector<1x8x1xf32>,
      %c1_49 = arith.constant 1 : index
      %c0_50 = arith.constant 0 : index
      %c0_51 = arith.constant 0 : index
      %87 = vector.load %arg9[%c1_49, %c0_50, %c0_51] : memref<4x8x8xf32, #tpu.memory_space<vmem>>, vector<1x8x8xf32>
      %88 = vector.shape_cast %87 : vector<1x8x8xf32> to vector<8x8xf32>
      %89 = vector.broadcast %74 : vector<8x1xf32> to vector<8x8xf32>
      %90 = arith.mulf %89, %88 : vector<8x8xf32>
      %91 = arith.truncf %77 : vector<8x8xf32> to vector<8x8xbf16>
      %92 = vector.extract_strided_slice %24 {offsets = [0, 8], sizes = [8, 8], strides = [1, 1]} : vector<8x32xbf16> to vector<8x8xbf16>
      %cst_52 = arith.constant dense<0.000000e+00> : vector<8x8xf32>
      %93 = tpu.matmul %91, %92, %cst_52 {dimension_numbers = #tpu.dot_dimension_numbers<[1], [0], [0], [1], [0, 0, 1, 1], [], []>} : vector<8x8xbf16>, vector<8x8xbf16>, vector<8x8xf32> -> vector<8x8xf32>
      %94 = arith.addf %90, %93 : vector<8x8xf32>
      %c1_53 = arith.constant 1 : index
      %c0_54 = arith.constant 0 : index
      %c0_55 = arith.constant 0 : index
      %95 = vector.load %arg9[%c1_53, %c0_54, %c0_55] : memref<4x8x8xf32, #tpu.memory_space<vmem>>, vector<1x8x8xf32>
      %96 = vector.shape_cast %95 : vector<1x8x8xf32> to vector<8x8xf32>
      %97 = vector.shape_cast %94 : vector<8x8xf32> to vector<1x8x8xf32>
      tpu.vector_store %arg9[%c1_53, %c0_54, %c0_55], %97 {strides = array<i32>} : memref<4x8x8xf32, #tpu.memory_space<vmem>>, vector<1x8x8xf32>,
      %c1_56 = arith.constant 1 : index
      %c0_57 = arith.constant 0 : index
      %c0_58 = arith.constant 0 : index
      %98 = vector.load %arg7[%c1_56, %c0_57, %c0_58] : memref<4x8x1xf32, #tpu.memory_space<vmem>>, vector<1x8x1xf32>
      %99 = vector.shape_cast %98 : vector<1x8x1xf32> to vector<8x1xf32>
      %100 = vector.shape_cast %72 : vector<8x1xf32> to vector<1x8x1xf32>
      tpu.vector_store %arg7[%c1_56, %c0_57, %c0_58], %100 {strides = array<i32>} : memref<4x8x1xf32, #tpu.memory_space<vmem>>, vector<1x8x1xf32>,
      %101 = vector.extract_strided_slice %20 {offsets = [0, 16], sizes = [8, 8], strides = [1, 1]} : vector<8x32xbf16> to vector<8x8xbf16>
      %cst_59 = arith.constant 3.535160e-01 : bf16
      %102 = vector.broadcast %cst_59 : bf16 to vector<8x8xbf16>
      %103 = arith.mulf %101, %102 : vector<8x8xbf16>
      %104 = vector.extract_strided_slice %22 {offsets = [0, 16], sizes = [8, 8], strides = [1, 1]} : vector<8x32xbf16> to vector<8x8xbf16>
      %cst_60 = arith.constant dense<0.000000e+00> : vector<8x8xf32>
      %105 = tpu.matmul %103, %104, %cst_60 {dimension_numbers = #tpu.dot_dimension_numbers<[1], [1], [0], [0], [0, 0, 1, 0], [], []>} : vector<8x8xbf16>, vector<8x8xbf16>, vector<8x8xf32> -> vector<8x8xf32>
      %c2 = arith.constant 2 : index
      %c0_61 = arith.constant 0 : index
      %c0_62 = arith.constant 0 : index
      %106 = vector.load %arg7[%c2, %c0_61, %c0_62] : memref<4x8x1xf32, #tpu.memory_space<vmem>>, vector<1x8x1xf32>
      %107 = vector.shape_cast %106 : vector<1x8x1xf32> to vector<8x1xf32>
      %cst_63 = arith.constant dense<0xFF800000> : vector<8xf32>
      %108 = vector.multi_reduction <maximumf>, %105, %cst_63 [1] : vector<8x8xf32> to vector<8xf32>
      %109 = vector.shape_cast %108 : vector<8xf32> to vector<8x1xf32>
      %110 = arith.maximumf %107, %109 : vector<8x1xf32>
      %111 = arith.subf %107, %110 : vector<8x1xf32>
      %112 = math.exp %111 : vector<8x1xf32>
      %113 = vector.broadcast %110 : vector<8x1xf32> to vector<8x8xf32>
      %114 = arith.subf %105, %113 : vector<8x8xf32>
      %115 = math.exp %114 : vector<8x8xf32>
      %c2_64 = arith.constant 2 : index
      %c0_65 = arith.constant 0 : index
      %c0_66 = arith.constant 0 : index
      %116 = vector.load %arg8[%c2_64, %c0_65, %c0_66] : memref<4x8x1xf32, #tpu.memory_space<vmem>>, vector<1x8x1xf32>
      %117 = vector.shape_cast %116 : vector<1x8x1xf32> to vector<8x1xf32>
      %118 = arith.mulf %112, %117 : vector<8x1xf32>
      %cst_67 = arith.constant dense<0.000000e+00> : vector<8xf32>
      %119 = vector.multi_reduction <add>, %115, %cst_67 [1] : vector<8x8xf32> to vector<8xf32>
      %120 = vector.shape_cast %119 : vector<8xf32> to vector<8x1xf32>
      %121 = arith.addf %118, %120 : vector<8x1xf32>
      %c2_68 = arith.constant 2 : index
      %c0_69 = arith.constant 0 : index
      %c0_70 = arith.constant 0 : index
      %122 = vector.load %arg8[%c2_68, %c0_69, %c0_70] : memref<4x8x1xf32, #tpu.memory_space<vmem>>, vector<1x8x1xf32>
      %123 = vector.shape_cast %122 : vector<1x8x1xf32> to vector<8x1xf32>
      %124 = vector.shape_cast %121 : vector<8x1xf32> to vector<1x8x1xf32>
      tpu.vector_store %arg8[%c2_68, %c0_69, %c0_70], %124 {strides = array<i32>} : memref<4x8x1xf32, #tpu.memory_space<vmem>>, vector<1x8x1xf32>,
      %c2_71 = arith.constant 2 : index
      %c0_72 = arith.constant 0 : index
      %c0_73 = arith.constant 0 : index
      %125 = vector.load %arg9[%c2_71, %c0_72, %c0_73] : memref<4x8x8xf32, #tpu.memory_space<vmem>>, vector<1x8x8xf32>
      %126 = vector.shape_cast %125 : vector<1x8x8xf32> to vector<8x8xf32>
      %127 = vector.broadcast %112 : vector<8x1xf32> to vector<8x8xf32>
      %128 = arith.mulf %127, %126 : vector<8x8xf32>
      %129 = arith.truncf %115 : vector<8x8xf32> to vector<8x8xbf16>
      %130 = vector.extract_strided_slice %24 {offsets = [0, 16], sizes = [8, 8], strides = [1, 1]} : vector<8x32xbf16> to vector<8x8xbf16>
      %cst_74 = arith.constant dense<0.000000e+00> : vector<8x8xf32>
      %131 = tpu.matmul %129, %130, %cst_74 {dimension_numbers = #tpu.dot_dimension_numbers<[1], [0], [0], [1], [0, 0, 1, 1], [], []>} : vector<8x8xbf16>, vector<8x8xbf16>, vector<8x8xf32> -> vector<8x8xf32>
      %132 = arith.addf %128, %131 : vector<8x8xf32>
      %c2_75 = arith.constant 2 : index
      %c0_76 = arith.constant 0 : index
      %c0_77 = arith.constant 0 : index
      %133 = vector.load %arg9[%c2_75, %c0_76, %c0_77] : memref<4x8x8xf32, #tpu.memory_space<vmem>>, vector<1x8x8xf32>
      %134 = vector.shape_cast %133 : vector<1x8x8xf32> to vector<8x8xf32>
      %135 = vector.shape_cast %132 : vector<8x8xf32> to vector<1x8x8xf32>
      tpu.vector_store %arg9[%c2_75, %c0_76, %c0_77], %135 {strides = array<i32>} : memref<4x8x8xf32, #tpu.memory_space<vmem>>, vector<1x8x8xf32>,
      %c2_78 = arith.constant 2 : index
      %c0_79 = arith.constant 0 : index
      %c0_80 = arith.constant 0 : index
      %136 = vector.load %arg7[%c2_78, %c0_79, %c0_80] : memref<4x8x1xf32, #tpu.memory_space<vmem>>, vector<1x8x1xf32>
      %137 = vector.shape_cast %136 : vector<1x8x1xf32> to vector<8x1xf32>
      %138 = vector.shape_cast %110 : vector<8x1xf32> to vector<1x8x1xf32>
      tpu.vector_store %arg7[%c2_78, %c0_79, %c0_80], %138 {strides = array<i32>} : memref<4x8x1xf32, #tpu.memory_space<vmem>>, vector<1x8x1xf32>,
      %139 = vector.extract_strided_slice %20 {offsets = [0, 24], sizes = [8, 8], strides = [1, 1]} : vector<8x32xbf16> to vector<8x8xbf16>
      %cst_81 = arith.constant 3.535160e-01 : bf16
      %140 = vector.broadcast %cst_81 : bf16 to vector<8x8xbf16>
      %141 = arith.mulf %139, %140 : vector<8x8xbf16>
      %142 = vector.extract_strided_slice %22 {offsets = [0, 24], sizes = [8, 8], strides = [1, 1]} : vector<8x32xbf16> to vector<8x8xbf16>
      %cst_82 = arith.constant dense<0.000000e+00> : vector<8x8xf32>
      %143 = tpu.matmul %141, %142, %cst_82 {dimension_numbers = #tpu.dot_dimension_numbers<[1], [1], [0], [0], [0, 0, 1, 0], [], []>} : vector<8x8xbf16>, vector<8x8xbf16>, vector<8x8xf32> -> vector<8x8xf32>
      %c3 = arith.constant 3 : index
      %c0_83 = arith.constant 0 : index
      %c0_84 = arith.constant 0 : index
      %144 = vector.load %arg7[%c3, %c0_83, %c0_84] : memref<4x8x1xf32, #tpu.memory_space<vmem>>, vector<1x8x1xf32>
      %145 = vector.shape_cast %144 : vector<1x8x1xf32> to vector<8x1xf32>
      %cst_85 = arith.constant dense<0xFF800000> : vector<8xf32>
      %146 = vector.multi_reduction <maximumf>, %143, %cst_85 [1] : vector<8x8xf32> to vector<8xf32>
      %147 = vector.shape_cast %146 : vector<8xf32> to vector<8x1xf32>
      %148 = arith.maximumf %145, %147 : vector<8x1xf32>
      %149 = arith.subf %145, %148 : vector<8x1xf32>
      %150 = math.exp %149 : vector<8x1xf32>
      %151 = vector.broadcast %148 : vector<8x1xf32> to vector<8x8xf32>
      %152 = arith.subf %143, %151 : vector<8x8xf32>
      %153 = math.exp %152 : vector<8x8xf32>
      %c3_86 = arith.constant 3 : index
      %c0_87 = arith.constant 0 : index
      %c0_88 = arith.constant 0 : index
      %154 = vector.load %arg8[%c3_86, %c0_87, %c0_88] : memref<4x8x1xf32, #tpu.memory_space<vmem>>, vector<1x8x1xf32>
      %155 = vector.shape_cast %154 : vector<1x8x1xf32> to vector<8x1xf32>
      %156 = arith.mulf %150, %155 : vector<8x1xf32>
      %cst_89 = arith.constant dense<0.000000e+00> : vector<8xf32>
      %157 = vector.multi_reduction <add>, %153, %cst_89 [1] : vector<8x8xf32> to vector<8xf32>
      %158 = vector.shape_cast %157 : vector<8xf32> to vector<8x1xf32>
      %159 = arith.addf %156, %158 : vector<8x1xf32>
      %c3_90 = arith.constant 3 : index
      %c0_91 = arith.constant 0 : index
      %c0_92 = arith.constant 0 : index
      %160 = vector.load %arg8[%c3_90, %c0_91, %c0_92] : memref<4x8x1xf32, #tpu.memory_space<vmem>>, vector<1x8x1xf32>
      %161 = vector.shape_cast %160 : vector<1x8x1xf32> to vector<8x1xf32>
      %162 = vector.shape_cast %159 : vector<8x1xf32> to vector<1x8x1xf32>
      tpu.vector_store %arg8[%c3_90, %c0_91, %c0_92], %162 {strides = array<i32>} : memref<4x8x1xf32, #tpu.memory_space<vmem>>, vector<1x8x1xf32>,
      %c3_93 = arith.constant 3 : index
      %c0_94 = arith.constant 0 : index
      %c0_95 = arith.constant 0 : index
      %163 = vector.load %arg9[%c3_93, %c0_94, %c0_95] : memref<4x8x8xf32, #tpu.memory_space<vmem>>, vector<1x8x8xf32>
      %164 = vector.shape_cast %163 : vector<1x8x8xf32> to vector<8x8xf32>
      %165 = vector.broadcast %150 : vector<8x1xf32> to vector<8x8xf32>
      %166 = arith.mulf %165, %164 : vector<8x8xf32>
      %167 = arith.truncf %153 : vector<8x8xf32> to vector<8x8xbf16>
      %168 = vector.extract_strided_slice %24 {offsets = [0, 24], sizes = [8, 8], strides = [1, 1]} : vector<8x32xbf16> to vector<8x8xbf16>
      %cst_96 = arith.constant dense<0.000000e+00> : vector<8x8xf32>
      %169 = tpu.matmul %167, %168, %cst_96 {dimension_numbers = #tpu.dot_dimension_numbers<[1], [0], [0], [1], [0, 0, 1, 1], [], []>} : vector<8x8xbf16>, vector<8x8xbf16>, vector<8x8xf32> -> vector<8x8xf32>
      %170 = arith.addf %166, %169 : vector<8x8xf32>
      %c3_97 = arith.constant 3 : index
      %c0_98 = arith.constant 0 : index
      %c0_99 = arith.constant 0 : index
      %171 = vector.load %arg9[%c3_97, %c0_98, %c0_99] : memref<4x8x8xf32, #tpu.memory_space<vmem>>, vector<1x8x8xf32>
      %172 = vector.shape_cast %171 : vector<1x8x8xf32> to vector<8x8xf32>
      %173 = vector.shape_cast %170 : vector<8x8xf32> to vector<1x8x8xf32>
      tpu.vector_store %arg9[%c3_97, %c0_98, %c0_99], %173 {strides = array<i32>} : memref<4x8x8xf32, #tpu.memory_space<vmem>>, vector<1x8x8xf32>,
      %c3_100 = arith.constant 3 : index
      %c0_101 = arith.constant 0 : index
      %c0_102 = arith.constant 0 : index
      %174 = vector.load %arg7[%c3_100, %c0_101, %c0_102] : memref<4x8x1xf32, #tpu.memory_space<vmem>>, vector<1x8x1xf32>
      %175 = vector.shape_cast %174 : vector<1x8x1xf32> to vector<8x1xf32>
      %176 = vector.shape_cast %148 : vector<8x1xf32> to vector<1x8x1xf32>
      tpu.vector_store %arg7[%c3_100, %c0_101, %c0_102], %176 {strides = array<i32>} : memref<4x8x1xf32, #tpu.memory_space<vmem>>, vector<1x8x1xf32>,
    } else {
    }
    %true = arith.constant true
    %12 = arith.xori %8, %true : i1
    %13 = arith.andi %6, %12 : i1
    %14 = arith.extui %13 : i1 to i32
    %c0_i32_4 = arith.constant 0 : i32
    %15 = arith.cmpi ne, %14, %c0_i32_4 : i32
    scf.if %15 {
      %c0 = arith.constant 0 : index
      %c0_7 = arith.constant 0 : index
      %c0_8 = arith.constant 0 : index
      %19 = vector.load %arg3[%c0, %c0_7, %c0_8] : memref<1x8x32xbf16, #tpu.memory_space<vmem>>, vector<1x8x32xbf16>
      %20 = vector.shape_cast %19 : vector<1x8x32xbf16> to vector<8x32xbf16>
      %c0_9 = arith.constant 0 : index
      %c0_10 = arith.constant 0 : index
      %c0_11 = arith.constant 0 : index
      %21 = vector.load %arg4[%c0_9, %c0_10, %c0_11] : memref<1x8x32xbf16, #tpu.memory_space<vmem>>, vector<1x8x32xbf16>
      %22 = vector.shape_cast %21 : vector<1x8x32xbf16> to vector<8x32xbf16>
      %c0_12 = arith.constant 0 : index
      %c0_13 = arith.constant 0 : index
      %c0_14 = arith.constant 0 : index
      %23 = vector.load %arg5[%c0_12, %c0_13, %c0_14] : memref<1x8x32xbf16, #tpu.memory_space<vmem>>, vector<1x8x32xbf16>
      %24 = vector.shape_cast %23 : vector<1x8x32xbf16> to vector<8x32xbf16>
      %25 = tpu.iota {dimensions = array<i32: 0>} : vector<8x8xi32>
      %26 = vector.broadcast %3 : i32 to vector<8x8xi32>
      %27 = arith.addi %26, %25 : vector<8x8xi32>
      %28 = tpu.iota {dimensions = array<i32: 1>} : vector<8x8xi32>
      %29 = vector.broadcast %4 : i32 to vector<8x8xi32>
      %30 = arith.addi %29, %28 : vector<8x8xi32>
      %31 = arith.cmpi sle, %30, %27 : vector<8x8xi32>
      %32 = vector.extract_strided_slice %20 {offsets = [0, 0], sizes = [8, 8], strides = [1, 1]} : vector<8x32xbf16> to vector<8x8xbf16>
      %cst = arith.constant 3.535160e-01 : bf16
      %33 = vector.broadcast %cst : bf16 to vector<8x8xbf16>
      %34 = arith.mulf %32, %33 : vector<8x8xbf16>
      %35 = vector.extract_strided_slice %22 {offsets = [0, 0], sizes = [8, 8], strides = [1, 1]} : vector<8x32xbf16> to vector<8x8xbf16>
      %cst_15 = arith.constant dense<0.000000e+00> : vector<8x8xf32>
      %36 = tpu.matmul %34, %35, %cst_15 {dimension_numbers = #tpu.dot_dimension_numbers<[1], [1], [0], [0], [0, 0, 1, 0], [], []>} : vector<8x8xbf16>, vector<8x8xbf16>, vector<8x8xf32> -> vector<8x8xf32>
      %cst_16 = arith.constant -1.000000e+30 : f32
      %37 = vector.broadcast %cst_16 : f32 to vector<8x8xf32>
      %38 = arith.select %31, %36, %37 : vector<8x8xi1>, vector<8x8xf32>
      %c0_17 = arith.constant 0 : index
      %c0_18 = arith.constant 0 : index
      %c0_19 = arith.constant 0 : index
      %39 = vector.load %arg7[%c0_17, %c0_18, %c0_19] : memref<4x8x1xf32, #tpu.memory_space<vmem>>, vector<1x8x1xf32>
      %40 = vector.shape_cast %39 : vector<1x8x1xf32> to vector<8x1xf32>
      %cst_20 = arith.constant dense<0xFF800000> : vector<8xf32>
      %41 = vector.multi_reduction <maximumf>, %38, %cst_20 [1] : vector<8x8xf32> to vector<8xf32>
      %42 = vector.shape_cast %41 : vector<8xf32> to vector<8x1xf32>
      %43 = arith.maximumf %40, %42 : vector<8x1xf32>
      %44 = arith.subf %40, %43 : vector<8x1xf32>
      %45 = math.exp %44 : vector<8x1xf32>
      %46 = vector.broadcast %43 : vector<8x1xf32> to vector<8x8xf32>
      %47 = arith.subf %38, %46 : vector<8x8xf32>
      %48 = math.exp %47 : vector<8x8xf32>
      %c0_21 = arith.constant 0 : index
      %c0_22 = arith.constant 0 : index
      %c0_23 = arith.constant 0 : index
      %49 = vector.load %arg8[%c0_21, %c0_22, %c0_23] : memref<4x8x1xf32, #tpu.memory_space<vmem>>, vector<1x8x1xf32>
      %50 = vector.shape_cast %49 : vector<1x8x1xf32> to vector<8x1xf32>
      %51 = arith.mulf %45, %50 : vector<8x1xf32>
      %cst_24 = arith.constant dense<0.000000e+00> : vector<8xf32>
      %52 = vector.multi_reduction <add>, %48, %cst_24 [1] : vector<8x8xf32> to vector<8xf32>
      %53 = vector.shape_cast %52 : vector<8xf32> to vector<8x1xf32>
      %54 = arith.addf %51, %53 : vector<8x1xf32>
      %c0_25 = arith.constant 0 : index
      %c0_26 = arith.constant 0 : index
      %c0_27 = arith.constant 0 : index
      %55 = vector.load %arg8[%c0_25, %c0_26, %c0_27] : memref<4x8x1xf32, #tpu.memory_space<vmem>>, vector<1x8x1xf32>
      %56 = vector.shape_cast %55 : vector<1x8x1xf32> to vector<8x1xf32>
      %57 = vector.shape_cast %54 : vector<8x1xf32> to vector<1x8x1xf32>
      tpu.vector_store %arg8[%c0_25, %c0_26, %c0_27], %57 {strides = array<i32>} : memref<4x8x1xf32, #tpu.memory_space<vmem>>, vector<1x8x1xf32>,
      %c0_28 = arith.constant 0 : index
      %c0_29 = arith.constant 0 : index
      %c0_30 = arith.constant 0 : index
      %58 = vector.load %arg9[%c0_28, %c0_29, %c0_30] : memref<4x8x8xf32, #tpu.memory_space<vmem>>, vector<1x8x8xf32>
      %59 = vector.shape_cast %58 : vector<1x8x8xf32> to vector<8x8xf32>
      %60 = vector.broadcast %45 : vector<8x1xf32> to vector<8x8xf32>
      %61 = arith.mulf %60, %59 : vector<8x8xf32>
      %62 = arith.truncf %48 : vector<8x8xf32> to vector<8x8xbf16>
      %63 = vector.extract_strided_slice %24 {offsets = [0, 0], sizes = [8, 8], strides = [1, 1]} : vector<8x32xbf16> to vector<8x8xbf16>
      %cst_31 = arith.constant dense<0.000000e+00> : vector<8x8xf32>
      %64 = tpu.matmul %62, %63, %cst_31 {dimension_numbers = #tpu.dot_dimension_numbers<[1], [0], [0], [1], [0, 0, 1, 1], [], []>} : vector<8x8xbf16>, vector<8x8xbf16>, vector<8x8xf32> -> vector<8x8xf32>
      %65 = arith.addf %61, %64 : vector<8x8xf32>
      %c0_32 = arith.constant 0 : index
      %c0_33 = arith.constant 0 : index
      %c0_34 = arith.constant 0 : index
      %66 = vector.load %arg9[%c0_32, %c0_33, %c0_34] : memref<4x8x8xf32, #tpu.memory_space<vmem>>, vector<1x8x8xf32>
      %67 = vector.shape_cast %66 : vector<1x8x8xf32> to vector<8x8xf32>
      %68 = vector.shape_cast %65 : vector<8x8xf32> to vector<1x8x8xf32>
      tpu.vector_store %arg9[%c0_32, %c0_33, %c0_34], %68 {strides = array<i32>} : memref<4x8x8xf32, #tpu.memory_space<vmem>>, vector<1x8x8xf32>,
      %c0_35 = arith.constant 0 : index
      %c0_36 = arith.constant 0 : index
      %c0_37 = arith.constant 0 : index
      %69 = vector.load %arg7[%c0_35, %c0_36, %c0_37] : memref<4x8x1xf32, #tpu.memory_space<vmem>>, vector<1x8x1xf32>
      %70 = vector.shape_cast %69 : vector<1x8x1xf32> to vector<8x1xf32>
      %71 = vector.shape_cast %43 : vector<8x1xf32> to vector<1x8x1xf32>
      tpu.vector_store %arg7[%c0_35, %c0_36, %c0_37], %71 {strides = array<i32>} : memref<4x8x1xf32, #tpu.memory_space<vmem>>, vector<1x8x1xf32>,
      %72 = vector.extract_strided_slice %20 {offsets = [0, 8], sizes = [8, 8], strides = [1, 1]} : vector<8x32xbf16> to vector<8x8xbf16>
      %cst_38 = arith.constant 3.535160e-01 : bf16
      %73 = vector.broadcast %cst_38 : bf16 to vector<8x8xbf16>
      %74 = arith.mulf %72, %73 : vector<8x8xbf16>
      %75 = vector.extract_strided_slice %22 {offsets = [0, 8], sizes = [8, 8], strides = [1, 1]} : vector<8x32xbf16> to vector<8x8xbf16>
      %cst_39 = arith.constant dense<0.000000e+00> : vector<8x8xf32>
      %76 = tpu.matmul %74, %75, %cst_39 {dimension_numbers = #tpu.dot_dimension_numbers<[1], [1], [0], [0], [0, 0, 1, 0], [], []>} : vector<8x8xbf16>, vector<8x8xbf16>, vector<8x8xf32> -> vector<8x8xf32>
      %cst_40 = arith.constant -1.000000e+30 : f32
      %77 = vector.broadcast %cst_40 : f32 to vector<8x8xf32>
      %78 = arith.select %31, %76, %77 : vector<8x8xi1>, vector<8x8xf32>
      %c1 = arith.constant 1 : index
      %c0_41 = arith.constant 0 : index
      %c0_42 = arith.constant 0 : index
      %79 = vector.load %arg7[%c1, %c0_41, %c0_42] : memref<4x8x1xf32, #tpu.memory_space<vmem>>, vector<1x8x1xf32>
      %80 = vector.shape_cast %79 : vector<1x8x1xf32> to vector<8x1xf32>
      %cst_43 = arith.constant dense<0xFF800000> : vector<8xf32>
      %81 = vector.multi_reduction <maximumf>, %78, %cst_43 [1] : vector<8x8xf32> to vector<8xf32>
      %82 = vector.shape_cast %81 : vector<8xf32> to vector<8x1xf32>
      %83 = arith.maximumf %80, %82 : vector<8x1xf32>
      %84 = arith.subf %80, %83 : vector<8x1xf32>
      %85 = math.exp %84 : vector<8x1xf32>
      %86 = vector.broadcast %83 : vector<8x1xf32> to vector<8x8xf32>
      %87 = arith.subf %78, %86 : vector<8x8xf32>
      %88 = math.exp %87 : vector<8x8xf32>
      %c1_44 = arith.constant 1 : index
      %c0_45 = arith.constant 0 : index
      %c0_46 = arith.constant 0 : index
      %89 = vector.load %arg8[%c1_44, %c0_45, %c0_46] : memref<4x8x1xf32, #tpu.memory_space<vmem>>, vector<1x8x1xf32>
      %90 = vector.shape_cast %89 : vector<1x8x1xf32> to vector<8x1xf32>
      %91 = arith.mulf %85, %90 : vector<8x1xf32>
      %cst_47 = arith.constant dense<0.000000e+00> : vector<8xf32>
      %92 = vector.multi_reduction <add>, %88, %cst_47 [1] : vector<8x8xf32> to vector<8xf32>
      %93 = vector.shape_cast %92 : vector<8xf32> to vector<8x1xf32>
      %94 = arith.addf %91, %93 : vector<8x1xf32>
      %c1_48 = arith.constant 1 : index
      %c0_49 = arith.constant 0 : index
      %c0_50 = arith.constant 0 : index
      %95 = vector.load %arg8[%c1_48, %c0_49, %c0_50] : memref<4x8x1xf32, #tpu.memory_space<vmem>>, vector<1x8x1xf32>
      %96 = vector.shape_cast %95 : vector<1x8x1xf32> to vector<8x1xf32>
      %97 = vector.shape_cast %94 : vector<8x1xf32> to vector<1x8x1xf32>
      tpu.vector_store %arg8[%c1_48, %c0_49, %c0_50], %97 {strides = array<i32>} : memref<4x8x1xf32, #tpu.memory_space<vmem>>, vector<1x8x1xf32>,
      %c1_51 = arith.constant 1 : index
      %c0_52 = arith.constant 0 : index
      %c0_53 = arith.constant 0 : index
      %98 = vector.load %arg9[%c1_51, %c0_52, %c0_53] : memref<4x8x8xf32, #tpu.memory_space<vmem>>, vector<1x8x8xf32>
      %99 = vector.shape_cast %98 : vector<1x8x8xf32> to vector<8x8xf32>
      %100 = vector.broadcast %85 : vector<8x1xf32> to vector<8x8xf32>
      %101 = arith.mulf %100, %99 : vector<8x8xf32>
      %102 = arith.truncf %88 : vector<8x8xf32> to vector<8x8xbf16>
      %103 = vector.extract_strided_slice %24 {offsets = [0, 8], sizes = [8, 8], strides = [1, 1]} : vector<8x32xbf16> to vector<8x8xbf16>
      %cst_54 = arith.constant dense<0.000000e+00> : vector<8x8xf32>
      %104 = tpu.matmul %102, %103, %cst_54 {dimension_numbers = #tpu.dot_dimension_numbers<[1], [0], [0], [1], [0, 0, 1, 1], [], []>} : vector<8x8xbf16>, vector<8x8xbf16>, vector<8x8xf32> -> vector<8x8xf32>
      %105 = arith.addf %101, %104 : vector<8x8xf32>
      %c1_55 = arith.constant 1 : index
      %c0_56 = arith.constant 0 : index
      %c0_57 = arith.constant 0 : index
      %106 = vector.load %arg9[%c1_55, %c0_56, %c0_57] : memref<4x8x8xf32, #tpu.memory_space<vmem>>, vector<1x8x8xf32>
      %107 = vector.shape_cast %106 : vector<1x8x8xf32> to vector<8x8xf32>
      %108 = vector.shape_cast %105 : vector<8x8xf32> to vector<1x8x8xf32>
      tpu.vector_store %arg9[%c1_55, %c0_56, %c0_57], %108 {strides = array<i32>} : memref<4x8x8xf32, #tpu.memory_space<vmem>>, vector<1x8x8xf32>,
      %c1_58 = arith.constant 1 : index
      %c0_59 = arith.constant 0 : index
      %c0_60 = arith.constant 0 : index
      %109 = vector.load %arg7[%c1_58, %c0_59, %c0_60] : memref<4x8x1xf32, #tpu.memory_space<vmem>>, vector<1x8x1xf32>
      %110 = vector.shape_cast %109 : vector<1x8x1xf32> to vector<8x1xf32>
      %111 = vector.shape_cast %83 : vector<8x1xf32> to vector<1x8x1xf32>
      tpu.vector_store %arg7[%c1_58, %c0_59, %c0_60], %111 {strides = array<i32>} : memref<4x8x1xf32, #tpu.memory_space<vmem>>, vector<1x8x1xf32>,
      %112 = vector.extract_strided_slice %20 {offsets = [0, 16], sizes = [8, 8], strides = [1, 1]} : vector<8x32xbf16> to vector<8x8xbf16>
      %cst_61 = arith.constant 3.535160e-01 : bf16
      %113 = vector.broadcast %cst_61 : bf16 to vector<8x8xbf16>
      %114 = arith.mulf %112, %113 : vector<8x8xbf16>
      %115 = vector.extract_strided_slice %22 {offsets = [0, 16], sizes = [8, 8], strides = [1, 1]} : vector<8x32xbf16> to vector<8x8xbf16>
      %cst_62 = arith.constant dense<0.000000e+00> : vector<8x8xf32>
      %116 = tpu.matmul %114, %115, %cst_62 {dimension_numbers = #tpu.dot_dimension_numbers<[1], [1], [0], [0], [0, 0, 1, 0], [], []>} : vector<8x8xbf16>, vector<8x8xbf16>, vector<8x8xf32> -> vector<8x8xf32>
      %cst_63 = arith.constant -1.000000e+30 : f32
      %117 = vector.broadcast %cst_63 : f32 to vector<8x8xf32>
      %118 = arith.select %31, %116, %117 : vector<8x8xi1>, vector<8x8xf32>
      %c2 = arith.constant 2 : index
      %c0_64 = arith.constant 0 : index
      %c0_65 = arith.constant 0 : index
      %119 = vector.load %arg7[%c2, %c0_64, %c0_65] : memref<4x8x1xf32, #tpu.memory_space<vmem>>, vector<1x8x1xf32>
      %120 = vector.shape_cast %119 : vector<1x8x1xf32> to vector<8x1xf32>
      %cst_66 = arith.constant dense<0xFF800000> : vector<8xf32>
      %121 = vector.multi_reduction <maximumf>, %118, %cst_66 [1] : vector<8x8xf32> to vector<8xf32>
      %122 = vector.shape_cast %121 : vector<8xf32> to vector<8x1xf32>
      %123 = arith.maximumf %120, %122 : vector<8x1xf32>
      %124 = arith.subf %120, %123 : vector<8x1xf32>
      %125 = math.exp %124 : vector<8x1xf32>
      %126 = vector.broadcast %123 : vector<8x1xf32> to vector<8x8xf32>
      %127 = arith.subf %118, %126 : vector<8x8xf32>
      %128 = math.exp %127 : vector<8x8xf32>
      %c2_67 = arith.constant 2 : index
      %c0_68 = arith.constant 0 : index
      %c0_69 = arith.constant 0 : index
      %129 = vector.load %arg8[%c2_67, %c0_68, %c0_69] : memref<4x8x1xf32, #tpu.memory_space<vmem>>, vector<1x8x1xf32>
      %130 = vector.shape_cast %129 : vector<1x8x1xf32> to vector<8x1xf32>
      %131 = arith.mulf %125, %130 : vector<8x1xf32>
      %cst_70 = arith.constant dense<0.000000e+00> : vector<8xf32>
      %132 = vector.multi_reduction <add>, %128, %cst_70 [1] : vector<8x8xf32> to vector<8xf32>
      %133 = vector.shape_cast %132 : vector<8xf32> to vector<8x1xf32>
      %134 = arith.addf %131, %133 : vector<8x1xf32>
      %c2_71 = arith.constant 2 : index
      %c0_72 = arith.constant 0 : index
      %c0_73 = arith.constant 0 : index
      %135 = vector.load %arg8[%c2_71, %c0_72, %c0_73] : memref<4x8x1xf32, #tpu.memory_space<vmem>>, vector<1x8x1xf32>
      %136 = vector.shape_cast %135 : vector<1x8x1xf32> to vector<8x1xf32>
      %137 = vector.shape_cast %134 : vector<8x1xf32> to vector<1x8x1xf32>
      tpu.vector_store %arg8[%c2_71, %c0_72, %c0_73], %137 {strides = array<i32>} : memref<4x8x1xf32, #tpu.memory_space<vmem>>, vector<1x8x1xf32>,
      %c2_74 = arith.constant 2 : index
      %c0_75 = arith.constant 0 : index
      %c0_76 = arith.constant 0 : index
      %138 = vector.load %arg9[%c2_74, %c0_75, %c0_76] : memref<4x8x8xf32, #tpu.memory_space<vmem>>, vector<1x8x8xf32>
      %139 = vector.shape_cast %138 : vector<1x8x8xf32> to vector<8x8xf32>
      %140 = vector.broadcast %125 : vector<8x1xf32> to vector<8x8xf32>
      %141 = arith.mulf %140, %139 : vector<8x8xf32>
      %142 = arith.truncf %128 : vector<8x8xf32> to vector<8x8xbf16>
      %143 = vector.extract_strided_slice %24 {offsets = [0, 16], sizes = [8, 8], strides = [1, 1]} : vector<8x32xbf16> to vector<8x8xbf16>
      %cst_77 = arith.constant dense<0.000000e+00> : vector<8x8xf32>
      %144 = tpu.matmul %142, %143, %cst_77 {dimension_numbers = #tpu.dot_dimension_numbers<[1], [0], [0], [1], [0, 0, 1, 1], [], []>} : vector<8x8xbf16>, vector<8x8xbf16>, vector<8x8xf32> -> vector<8x8xf32>
      %145 = arith.addf %141, %144 : vector<8x8xf32>
      %c2_78 = arith.constant 2 : index
      %c0_79 = arith.constant 0 : index
      %c0_80 = arith.constant 0 : index
      %146 = vector.load %arg9[%c2_78, %c0_79, %c0_80] : memref<4x8x8xf32, #tpu.memory_space<vmem>>, vector<1x8x8xf32>
      %147 = vector.shape_cast %146 : vector<1x8x8xf32> to vector<8x8xf32>
      %148 = vector.shape_cast %145 : vector<8x8xf32> to vector<1x8x8xf32>
      tpu.vector_store %arg9[%c2_78, %c0_79, %c0_80], %148 {strides = array<i32>} : memref<4x8x8xf32, #tpu.memory_space<vmem>>, vector<1x8x8xf32>,
      %c2_81 = arith.constant 2 : index
      %c0_82 = arith.constant 0 : index
      %c0_83 = arith.constant 0 : index
      %149 = vector.load %arg7[%c2_81, %c0_82, %c0_83] : memref<4x8x1xf32, #tpu.memory_space<vmem>>, vector<1x8x1xf32>
      %150 = vector.shape_cast %149 : vector<1x8x1xf32> to vector<8x1xf32>
      %151 = vector.shape_cast %123 : vector<8x1xf32> to vector<1x8x1xf32>
      tpu.vector_store %arg7[%c2_81, %c0_82, %c0_83], %151 {strides = array<i32>} : memref<4x8x1xf32, #tpu.memory_space<vmem>>, vector<1x8x1xf32>,
      %152 = vector.extract_strided_slice %20 {offsets = [0, 24], sizes = [8, 8], strides = [1, 1]} : vector<8x32xbf16> to vector<8x8xbf16>
      %cst_84 = arith.constant 3.535160e-01 : bf16
      %153 = vector.broadcast %cst_84 : bf16 to vector<8x8xbf16>
      %154 = arith.mulf %152, %153 : vector<8x8xbf16>
      %155 = vector.extract_strided_slice %22 {offsets = [0, 24], sizes = [8, 8], strides = [1, 1]} : vector<8x32xbf16> to vector<8x8xbf16>
      %cst_85 = arith.constant dense<0.000000e+00> : vector<8x8xf32>
      %156 = tpu.matmul %154, %155, %cst_85 {dimension_numbers = #tpu.dot_dimension_numbers<[1], [1], [0], [0], [0, 0, 1, 0], [], []>} : vector<8x8xbf16>, vector<8x8xbf16>, vector<8x8xf32> -> vector<8x8xf32>
      %cst_86 = arith.constant -1.000000e+30 : f32
      %157 = vector.broadcast %cst_86 : f32 to vector<8x8xf32>
      %158 = arith.select %31, %156, %157 : vector<8x8xi1>, vector<8x8xf32>
      %c3 = arith.constant 3 : index
      %c0_87 = arith.constant 0 : index
      %c0_88 = arith.constant 0 : index
      %159 = vector.load %arg7[%c3, %c0_87, %c0_88] : memref<4x8x1xf32, #tpu.memory_space<vmem>>, vector<1x8x1xf32>
      %160 = vector.shape_cast %159 : vector<1x8x1xf32> to vector<8x1xf32>
      %cst_89 = arith.constant dense<0xFF800000> : vector<8xf32>
      %161 = vector.multi_reduction <maximumf>, %158, %cst_89 [1] : vector<8x8xf32> to vector<8xf32>
      %162 = vector.shape_cast %161 : vector<8xf32> to vector<8x1xf32>
      %163 = arith.maximumf %160, %162 : vector<8x1xf32>
      %164 = arith.subf %160, %163 : vector<8x1xf32>
      %165 = math.exp %164 : vector<8x1xf32>
      %166 = vector.broadcast %163 : vector<8x1xf32> to vector<8x8xf32>
      %167 = arith.subf %158, %166 : vector<8x8xf32>
      %168 = math.exp %167 : vector<8x8xf32>
      %c3_90 = arith.constant 3 : index
      %c0_91 = arith.constant 0 : index
      %c0_92 = arith.constant 0 : index
      %169 = vector.load %arg8[%c3_90, %c0_91, %c0_92] : memref<4x8x1xf32, #tpu.memory_space<vmem>>, vector<1x8x1xf32>
      %170 = vector.shape_cast %169 : vector<1x8x1xf32> to vector<8x1xf32>
      %171 = arith.mulf %165, %170 : vector<8x1xf32>
      %cst_93 = arith.constant dense<0.000000e+00> : vector<8xf32>
      %172 = vector.multi_reduction <add>, %168, %cst_93 [1] : vector<8x8xf32> to vector<8xf32>
      %173 = vector.shape_cast %172 : vector<8xf32> to vector<8x1xf32>
      %174 = arith.addf %171, %173 : vector<8x1xf32>
      %c3_94 = arith.constant 3 : index
      %c0_95 = arith.constant 0 : index
      %c0_96 = arith.constant 0 : index
      %175 = vector.load %arg8[%c3_94, %c0_95, %c0_96] : memref<4x8x1xf32, #tpu.memory_space<vmem>>, vector<1x8x1xf32>
      %176 = vector.shape_cast %175 : vector<1x8x1xf32> to vector<8x1xf32>
      %177 = vector.shape_cast %174 : vector<8x1xf32> to vector<1x8x1xf32>
      tpu.vector_store %arg8[%c3_94, %c0_95, %c0_96], %177 {strides = array<i32>} : memref<4x8x1xf32, #tpu.memory_space<vmem>>, vector<1x8x1xf32>,
      %c3_97 = arith.constant 3 : index
      %c0_98 = arith.constant 0 : index
      %c0_99 = arith.constant 0 : index
      %178 = vector.load %arg9[%c3_97, %c0_98, %c0_99] : memref<4x8x8xf32, #tpu.memory_space<vmem>>, vector<1x8x8xf32>
      %179 = vector.shape_cast %178 : vector<1x8x8xf32> to vector<8x8xf32>
      %180 = vector.broadcast %165 : vector<8x1xf32> to vector<8x8xf32>
      %181 = arith.mulf %180, %179 : vector<8x8xf32>
      %182 = arith.truncf %168 : vector<8x8xf32> to vector<8x8xbf16>
      %183 = vector.extract_strided_slice %24 {offsets = [0, 24], sizes = [8, 8], strides = [1, 1]} : vector<8x32xbf16> to vector<8x8xbf16>
      %cst_100 = arith.constant dense<0.000000e+00> : vector<8x8xf32>
      %184 = tpu.matmul %182, %183, %cst_100 {dimension_numbers = #tpu.dot_dimension_numbers<[1], [0], [0], [1], [0, 0, 1, 1], [], []>} : vector<8x8xbf16>, vector<8x8xbf16>, vector<8x8xf32> -> vector<8x8xf32>
      %185 = arith.addf %181, %184 : vector<8x8xf32>
      %c3_101 = arith.constant 3 : index
      %c0_102 = arith.constant 0 : index
      %c0_103 = arith.constant 0 : index
      %186 = vector.load %arg9[%c3_101, %c0_102, %c0_103] : memref<4x8x8xf32, #tpu.memory_space<vmem>>, vector<1x8x8xf32>
      %187 = vector.shape_cast %186 : vector<1x8x8xf32> to vector<8x8xf32>
      %188 = vector.shape_cast %185 : vector<8x8xf32> to vector<1x8x8xf32>
      tpu.vector_store %arg9[%c3_101, %c0_102, %c0_103], %188 {strides = array<i32>} : memref<4x8x8xf32, #tpu.memory_space<vmem>>, vector<1x8x8xf32>,
      %c3_104 = arith.constant 3 : index
      %c0_105 = arith.constant 0 : index
      %c0_106 = arith.constant 0 : index
      %189 = vector.load %arg7[%c3_104, %c0_105, %c0_106] : memref<4x8x1xf32, #tpu.memory_space<vmem>>, vector<1x8x1xf32>
      %190 = vector.shape_cast %189 : vector<1x8x1xf32> to vector<8x1xf32>
      %191 = vector.shape_cast %163 : vector<8x1xf32> to vector<1x8x1xf32>
      tpu.vector_store %arg7[%c3_104, %c0_105, %c0_106], %191 {strides = array<i32>} : memref<4x8x1xf32, #tpu.memory_space<vmem>>, vector<1x8x1xf32>,
    } else {
    }
    %c0_i32_5 = arith.constant 0 : i32
    %16 = arith.cmpi eq, %arg2, %c0_i32_5 : i32
    %17 = arith.extui %16 : i1 to i32
    %c0_i32_6 = arith.constant 0 : i32
    %18 = arith.cmpi ne, %17, %c0_i32_6 : i32
    scf.if %18 {
      %c0 = arith.constant 0 : index
      %c0_7 = arith.constant 0 : index
      %c0_8 = arith.constant 0 : index
      %19 = vector.load %arg8[%c0, %c0_7, %c0_8] : memref<4x8x1xf32, #tpu.memory_space<vmem>>, vector<4x8x1xf32>
      %cst = arith.constant 1.000000e+00 : f32
      %20 = vector.broadcast %cst : f32 to vector<4x8x1xf32>
      %21 = arith.divf %20, %19 : vector<4x8x1xf32>
      %c0_9 = arith.constant 0 : index
      %c0_10 = arith.constant 0 : index
      %c0_11 = arith.constant 0 : index
      %22 = vector.load %arg9[%c0_9, %c0_10, %c0_11] : memref<4x8x8xf32, #tpu.memory_space<vmem>>, vector<1x8x8xf32>
      %23 = vector.shape_cast %22 : vector<1x8x8xf32> to vector<8x8xf32>
      %24 = vector.extract_strided_slice %21 {offsets = [0, 0, 0], sizes = [1, 8, 1], strides = [1, 1, 1]} : vector<4x8x1xf32> to vector<1x8x1xf32>
      %25 = vector.shape_cast %24 : vector<1x8x1xf32> to vector<8x1xf32>
      %26 = vector.broadcast %25 : vector<8x1xf32> to vector<8x8xf32>
      %27 = arith.mulf %23, %26 : vector<8x8xf32>
      %c1 = arith.constant 1 : index
      %c0_12 = arith.constant 0 : index
      %c0_13 = arith.constant 0 : index
      %28 = vector.load %arg9[%c1, %c0_12, %c0_13] : memref<4x8x8xf32, #tpu.memory_space<vmem>>, vector<1x8x8xf32>
      %29 = vector.shape_cast %28 : vector<1x8x8xf32> to vector<8x8xf32>
      %30 = vector.extract_strided_slice %21 {offsets = [1, 0, 0], sizes = [1, 8, 1], strides = [1, 1, 1]} : vector<4x8x1xf32> to vector<1x8x1xf32>
      %31 = vector.shape_cast %30 : vector<1x8x1xf32> to vector<8x1xf32>
      %32 = vector.broadcast %31 : vector<8x1xf32> to vector<8x8xf32>
      %33 = arith.mulf %29, %32 : vector<8x8xf32>
      %c2 = arith.constant 2 : index
      %c0_14 = arith.constant 0 : index
      %c0_15 = arith.constant 0 : index
      %34 = vector.load %arg9[%c2, %c0_14, %c0_15] : memref<4x8x8xf32, #tpu.memory_space<vmem>>, vector<1x8x8xf32>
      %35 = vector.shape_cast %34 : vector<1x8x8xf32> to vector<8x8xf32>
      %36 = vector.extract_strided_slice %21 {offsets = [2, 0, 0], sizes = [1, 8, 1], strides = [1, 1, 1]} : vector<4x8x1xf32> to vector<1x8x1xf32>
      %37 = vector.shape_cast %36 : vector<1x8x1xf32> to vector<8x1xf32>
      %38 = vector.broadcast %37 : vector<8x1xf32> to vector<8x8xf32>
      %39 = arith.mulf %35, %38 : vector<8x8xf32>
      %c3 = arith.constant 3 : index
      %c0_16 = arith.constant 0 : index
      %c0_17 = arith.constant 0 : index
      %40 = vector.load %arg9[%c3, %c0_16, %c0_17] : memref<4x8x8xf32, #tpu.memory_space<vmem>>, vector<1x8x8xf32>
      %41 = vector.shape_cast %40 : vector<1x8x8xf32> to vector<8x8xf32>
      %42 = vector.extract_strided_slice %21 {offsets = [3, 0, 0], sizes = [1, 8, 1], strides = [1, 1, 1]} : vector<4x8x1xf32> to vector<1x8x1xf32>
      %43 = vector.shape_cast %42 : vector<1x8x1xf32> to vector<8x1xf32>
      %44 = vector.broadcast %43 : vector<8x1xf32> to vector<8x8xf32>
      %45 = arith.mulf %41, %44 : vector<8x8xf32>
      %46 = tpu.concatenate %27, %33, %39, %45 in 1 : vector<8x8xf32>, vector<8x8xf32>, vector<8x8xf32>, vector<8x8xf32> -> vector<8x32xf32>
      %47 = arith.truncf %46 : vector<8x32xf32> to vector<8x32xbf16>
      %c0_18 = arith.constant 0 : index
      %c0_19 = arith.constant 0 : index
      %c0_20 = arith.constant 0 : index
      %48 = vector.load %arg6[%c0_18, %c0_19, %c0_20] : memref<1x8x32xbf16, #tpu.memory_space<vmem>>, vector<1x8x32xbf16>
      %49 = vector.shape_cast %48 : vector<1x8x32xbf16> to vector<8x32xbf16>
      %50 = vector.shape_cast %47 : vector<8x32xbf16> to vector<1x8x32xbf16>
      tpu.vector_store %arg6[%c0_18, %c0_19, %c0_20], %50 {strides = array<i32>} : memref<1x8x32xbf16, #tpu.memory_space<vmem>>, vector<1x8x32xbf16>,
    } else {
    }
    return
  }
  func.func @transform_0(%arg0: i32, %arg1: i32, %arg2: i32) -> (i32, i32, i32) {
    %c0_i32 = arith.constant 0 : i32
    %c0_i32_0 = arith.constant 0 : i32
    return %arg0, %arg1, %c0_i32 : i32, i32, i32
  }
  func.func @transform_1(%arg0: i32, %arg1: i32, %arg2: i32) -> (i32, i32, i32) {
    %0 = arith.minsi %arg2, %arg1 : i32
    %c0_i32 = arith.constant 0 : i32
    %c0_i32_0 = arith.constant 0 : i32
    return %arg0, %0, %c0_i32 : i32, i32, i32
  }
  func.func @transform_2(%arg0: i32, %arg1: i32, %arg2: i32) -> (i32, i32, i32) {
    %0 = arith.minsi %arg2, %arg1 : i32
    %c0_i32 = arith.constant 0 : i32
    %c0_i32_0 = arith.constant 0 : i32
    return %arg0, %0, %c0_i32 : i32, i32, i32
  }
  func.func @transform_3(%arg0: i32, %arg1: i32, %arg2: i32) -> (i32, i32, i32) {
    %c0_i32 = arith.constant 0 : i32
    %c0_i32_0 = arith.constant 0 : i32
    return %arg0, %arg1, %c0_i32 : i32, i32, i32
  }
}

module attributes {stable_mosaic.version = 11 : i64} {
  func.func @_linear_kernel(%arg0: i32, %arg1: i32, %arg2: i32, %arg3: memref<16x32xbf16, #tpu.memory_space<vmem>>, %arg4: memref<32x64xbf16, #tpu.memory_space<vmem>>, %arg5: memref<16x64xf32, #tpu.memory_space<vmem>>, %arg6: memref<16x64xf32, #tpu.memory_space<vmem>>) attributes {dimension_semantics = [#tpu.dimension_semantics<parallel>, #tpu.dimension_semantics<parallel>, #tpu.dimension_semantics<arbitrary>], iteration_bounds = array<i64: 1, 1, 1>, scalar_prefetch = 0 : i64, scratch_operands = 1 : i64, tpu.core_type = #tpu.core_type<tc>, window_params = [{transform_indices = @transform_0, window_bounds = array<i64: 16, 32>}, {transform_indices = @transform_1, window_bounds = array<i64: 32, 64>}, {transform_indices = @transform_2, window_bounds = array<i64: 16, 64>}]} {
    %c0_i32 = arith.constant 0 : i32
    %0 = arith.cmpi eq, %arg2, %c0_i32 : i32
    %1 = arith.extui %0 : i1 to i32
    %c0_i32_0 = arith.constant 0 : i32
    %2 = arith.cmpi ne, %1, %c0_i32_0 : i32
    scf.if %2 {
      %cst_10 = arith.constant 0.000000e+00 : f32
      %12 = vector.broadcast %cst_10 : f32 to vector<16x64xf32>
      %c0_11 = arith.constant 0 : index
      %c0_12 = arith.constant 0 : index
      %13 = vector.load %arg6[%c0_11, %c0_12] : memref<16x64xf32, #tpu.memory_space<vmem>>, vector<16x64xf32>
      tpu.vector_store %arg6[%c0_11, %c0_12], %12 {strides = array<i32>} : memref<16x64xf32, #tpu.memory_space<vmem>>, vector<16x64xf32>,
    } else {
    }
    %c0 = arith.constant 0 : index
    %c0_1 = arith.constant 0 : index
    %3 = vector.load %arg6[%c0, %c0_1] : memref<16x64xf32, #tpu.memory_space<vmem>>, vector<16x64xf32>
    %c0_2 = arith.constant 0 : index
    %c0_3 = arith.constant 0 : index
    %4 = vector.load %arg3[%c0_2, %c0_3] : memref<16x32xbf16, #tpu.memory_space<vmem>>, vector<16x32xbf16>
    %c0_4 = arith.constant 0 : index
    %c0_5 = arith.constant 0 : index
    %5 = vector.load %arg4[%c0_4, %c0_5] : memref<32x64xbf16, #tpu.memory_space<vmem>>, vector<32x64xbf16>
    %cst = arith.constant dense<0.000000e+00> : vector<16x64xf32>
    %6 = tpu.matmul %4, %5, %cst {dimension_numbers = #tpu.dot_dimension_numbers<[1], [0], [0], [1], [0, 0, 1, 1], [], []>} : vector<16x32xbf16>, vector<32x64xbf16>, vector<16x64xf32> -> vector<16x64xf32>
    %7 = arith.addf %3, %6 : vector<16x64xf32>
    %c0_6 = arith.constant 0 : index
    %c0_7 = arith.constant 0 : index
    %8 = vector.load %arg6[%c0_6, %c0_7] : memref<16x64xf32, #tpu.memory_space<vmem>>, vector<16x64xf32>
    tpu.vector_store %arg6[%c0_6, %c0_7], %7 {strides = array<i32>} : memref<16x64xf32, #tpu.memory_space<vmem>>, vector<16x64xf32>,
    %c0_i32_8 = arith.constant 0 : i32
    %9 = arith.cmpi eq, %arg2, %c0_i32_8 : i32
    %10 = arith.extui %9 : i1 to i32
    %c0_i32_9 = arith.constant 0 : i32
    %11 = arith.cmpi ne, %10, %c0_i32_9 : i32
    scf.if %11 {
      %c0_10 = arith.constant 0 : index
      %c0_11 = arith.constant 0 : index
      %12 = vector.load %arg6[%c0_10, %c0_11] : memref<16x64xf32, #tpu.memory_space<vmem>>, vector<16x64xf32>
      %c0_12 = arith.constant 0 : index
      %c0_13 = arith.constant 0 : index
      %13 = vector.load %arg5[%c0_12, %c0_13] : memref<16x64xf32, #tpu.memory_space<vmem>>, vector<16x64xf32>
      tpu.vector_store %arg5[%c0_12, %c0_13], %12 {strides = array<i32>} : memref<16x64xf32, #tpu.memory_space<vmem>>, vector<16x64xf32>,
    } else {
    }
    return
  }
  func.func @transform_0(%arg0: i32, %arg1: i32, %arg2: i32) -> (i32, i32) {
    %c0_i32 = arith.constant 0 : i32
    return %arg0, %arg2 : i32, i32
  }
  func.func @transform_1(%arg0: i32, %arg1: i32, %arg2: i32) -> (i32, i32) {
    %c0_i32 = arith.constant 0 : i32
    return %arg2, %arg1 : i32, i32
  }
  func.func @transform_2(%arg0: i32, %arg1: i32, %arg2: i32) -> (i32, i32) {
    %c0_i32 = arith.constant 0 : i32
    return %arg0, %arg1 : i32, i32
  }
}

module attributes {stable_mosaic.version = 11 : i64} {
  func.func @_linear_kernel(%arg0: i32, %arg1: i32, %arg2: i32, %arg3: memref<16x32xbf16, #tpu.memory_space<vmem>>, %arg4: memref<32x128xbf16, #tpu.memory_space<vmem>>, %arg5: memref<1x128xf32, #tpu.memory_space<vmem>>, %arg6: memref<16x128xbf16, #tpu.memory_space<vmem>>, %arg7: memref<16x128xf32, #tpu.memory_space<vmem>>) attributes {dimension_semantics = [#tpu.dimension_semantics<parallel>, #tpu.dimension_semantics<parallel>, #tpu.dimension_semantics<arbitrary>], iteration_bounds = array<i64: 1, 1, 1>, scalar_prefetch = 0 : i64, scratch_operands = 1 : i64, tpu.core_type = #tpu.core_type<tc>, window_params = [{transform_indices = @transform_0, window_bounds = array<i64: 16, 32>}, {transform_indices = @transform_1, window_bounds = array<i64: 32, 128>}, {transform_indices = @transform_2, window_bounds = array<i64: 1, 128>}, {transform_indices = @transform_3, window_bounds = array<i64: 16, 128>}]} {
    %c0_i32 = arith.constant 0 : i32
    %0 = arith.cmpi eq, %arg2, %c0_i32 : i32
    %1 = arith.extui %0 : i1 to i32
    %c0_i32_0 = arith.constant 0 : i32
    %2 = arith.cmpi ne, %1, %c0_i32_0 : i32
    scf.if %2 {
      %cst_10 = arith.constant 0.000000e+00 : f32
      %12 = vector.broadcast %cst_10 : f32 to vector<16x128xf32>
      %c0_11 = arith.constant 0 : index
      %c0_12 = arith.constant 0 : index
      %13 = vector.load %arg7[%c0_11, %c0_12] : memref<16x128xf32, #tpu.memory_space<vmem>>, vector<16x128xf32>
      tpu.vector_store %arg7[%c0_11, %c0_12], %12 {strides = array<i32>} : memref<16x128xf32, #tpu.memory_space<vmem>>, vector<16x128xf32>,
    } else {
    }
    %c0 = arith.constant 0 : index
    %c0_1 = arith.constant 0 : index
    %3 = vector.load %arg7[%c0, %c0_1] : memref<16x128xf32, #tpu.memory_space<vmem>>, vector<16x128xf32>
    %c0_2 = arith.constant 0 : index
    %c0_3 = arith.constant 0 : index
    %4 = vector.load %arg3[%c0_2, %c0_3] : memref<16x32xbf16, #tpu.memory_space<vmem>>, vector<16x32xbf16>
    %c0_4 = arith.constant 0 : index
    %c0_5 = arith.constant 0 : index
    %5 = vector.load %arg4[%c0_4, %c0_5] : memref<32x128xbf16, #tpu.memory_space<vmem>>, vector<32x128xbf16>
    %cst = arith.constant dense<0.000000e+00> : vector<16x128xf32>
    %6 = tpu.matmul %4, %5, %cst {dimension_numbers = #tpu.dot_dimension_numbers<[1], [0], [0], [1], [0, 0, 1, 1], [], []>} : vector<16x32xbf16>, vector<32x128xbf16>, vector<16x128xf32> -> vector<16x128xf32>
    %7 = arith.addf %3, %6 : vector<16x128xf32>
    %c0_6 = arith.constant 0 : index
    %c0_7 = arith.constant 0 : index
    %8 = vector.load %arg7[%c0_6, %c0_7] : memref<16x128xf32, #tpu.memory_space<vmem>>, vector<16x128xf32>
    tpu.vector_store %arg7[%c0_6, %c0_7], %7 {strides = array<i32>} : memref<16x128xf32, #tpu.memory_space<vmem>>, vector<16x128xf32>,
    %c0_i32_8 = arith.constant 0 : i32
    %9 = arith.cmpi eq, %arg2, %c0_i32_8 : i32
    %10 = arith.extui %9 : i1 to i32
    %c0_i32_9 = arith.constant 0 : i32
    %11 = arith.cmpi ne, %10, %c0_i32_9 : i32
    scf.if %11 {
      %c0_10 = arith.constant 0 : index
      %c0_11 = arith.constant 0 : index
      %12 = vector.load %arg7[%c0_10, %c0_11] : memref<16x128xf32, #tpu.memory_space<vmem>>, vector<16x128xf32>
      %c0_12 = arith.constant 0 : index
      %c0_13 = arith.constant 0 : index
      %13 = vector.load %arg5[%c0_12, %c0_13] : memref<1x128xf32, #tpu.memory_space<vmem>>, vector<1x128xf32>
      %14 = vector.broadcast %13 : vector<1x128xf32> to vector<16x128xf32>
      %15 = arith.addf %12, %14 : vector<16x128xf32>
      %cst_14 = arith.constant 0.707106769 : f32
      %16 = vector.broadcast %cst_14 : f32 to vector<16x128xf32>
      %17 = arith.mulf %15, %16 : vector<16x128xf32>
      %18 = math.absf %17 : vector<16x128xf32>
      %cst_15 = arith.constant 0.327591091 : f32
      %19 = vector.broadcast %cst_15 : f32 to vector<16x128xf32>
      %20 = arith.mulf %19, %18 : vector<16x128xf32>
      %cst_16 = arith.constant 1.000000e+00 : f32
      %21 = vector.broadcast %cst_16 : f32 to vector<16x128xf32>
      %22 = arith.addf %21, %20 : vector<16x128xf32>
      %23 = tpu.reciprocal %22 {approx = true} : vector<16x128xf32> -> vector<16x128xf32>
      %cst_17 = arith.constant 1.06140542 : f32
      %24 = vector.broadcast %cst_17 : f32 to vector<16x128xf32>
      %25 = arith.mulf %24, %23 : vector<16x128xf32>
      %cst_18 = arith.constant -1.45315206 : f32
      %26 = vector.broadcast %cst_18 : f32 to vector<16x128xf32>
      %27 = arith.addf %25, %26 : vector<16x128xf32>
      %28 = arith.mulf %27, %23 : vector<16x128xf32>
      %cst_19 = arith.constant 1.42141378 : f32
      %29 = vector.broadcast %cst_19 : f32 to vector<16x128xf32>
      %30 = arith.addf %28, %29 : vector<16x128xf32>
      %31 = arith.mulf %30, %23 : vector<16x128xf32>
      %cst_20 = arith.constant -0.284496725 : f32
      %32 = vector.broadcast %cst_20 : f32 to vector<16x128xf32>
      %33 = arith.addf %31, %32 : vector<16x128xf32>
      %34 = arith.mulf %33, %23 : vector<16x128xf32>
      %cst_21 = arith.constant 0.254829586 : f32
      %35 = vector.broadcast %cst_21 : f32 to vector<16x128xf32>
      %36 = arith.addf %34, %35 : vector<16x128xf32>
      %37 = arith.mulf %36, %23 : vector<16x128xf32>
      %cst_22 = arith.constant 0.000000e+00 : f32
      %38 = vector.broadcast %cst_22 : f32 to vector<16x128xf32>
      %39 = arith.subf %38, %18 : vector<16x128xf32>
      %40 = arith.mulf %39, %18 : vector<16x128xf32>
      %41 = math.exp %40 : vector<16x128xf32>
      %42 = arith.mulf %37, %41 : vector<16x128xf32>
      %cst_23 = arith.constant 1.000000e+00 : f32
      %43 = vector.broadcast %cst_23 : f32 to vector<16x128xf32>
      %44 = arith.subf %43, %42 : vector<16x128xf32>
      %cst_24 = arith.constant 0.000000e+00 : f32
      %45 = vector.broadcast %cst_24 : f32 to vector<16x128xf32>
      %46 = arith.cmpf oge, %17, %45 : vector<16x128xf32>
      %cst_25 = arith.constant 0.000000e+00 : f32
      %47 = vector.broadcast %cst_25 : f32 to vector<16x128xf32>
      %48 = arith.subf %47, %44 : vector<16x128xf32>
      %49 = arith.select %46, %44, %48 : vector<16x128xi1>, vector<16x128xf32>
      %cst_26 = arith.constant 5.000000e-01 : f32
      %50 = vector.broadcast %cst_26 : f32 to vector<16x128xf32>
      %51 = arith.mulf %50, %15 : vector<16x128xf32>
      %cst_27 = arith.constant 1.000000e+00 : f32
      %52 = vector.broadcast %cst_27 : f32 to vector<16x128xf32>
      %53 = arith.addf %52, %49 : vector<16x128xf32>
      %54 = arith.mulf %51, %53 : vector<16x128xf32>
      %55 = arith.truncf %54 : vector<16x128xf32> to vector<16x128xbf16>
      %c0_28 = arith.constant 0 : index
      %c0_29 = arith.constant 0 : index
      %56 = vector.load %arg6[%c0_28, %c0_29] : memref<16x128xbf16, #tpu.memory_space<vmem>>, vector<16x128xbf16>
      tpu.vector_store %arg6[%c0_28, %c0_29], %55 {strides = array<i32>} : memref<16x128xbf16, #tpu.memory_space<vmem>>, vector<16x128xbf16>,
    } else {
    }
    return
  }
  func.func @transform_0(%arg0: i32, %arg1: i32, %arg2: i32) -> (i32, i32) {
    %c0_i32 = arith.constant 0 : i32
    return %arg0, %arg2 : i32, i32
  }
  func.func @transform_1(%arg0: i32, %arg1: i32, %arg2: i32) -> (i32, i32) {
    %c0_i32 = arith.constant 0 : i32
    return %arg2, %arg1 : i32, i32
  }
  func.func @transform_2(%arg0: i32, %arg1: i32, %arg2: i32) -> (i32, i32) {
    %c0_i32 = arith.constant 0 : i32
    %c0_i32_0 = arith.constant 0 : i32
    return %c0_i32, %arg1 : i32, i32
  }
  func.func @transform_3(%arg0: i32, %arg1: i32, %arg2: i32) -> (i32, i32) {
    %c0_i32 = arith.constant 0 : i32
    return %arg0, %arg1 : i32, i32
  }
}

module attributes {stable_mosaic.version = 11 : i64} {
  func.func @_linear_kernel(%arg0: i32, %arg1: i32, %arg2: i32, %arg3: memref<16x128xbf16, #tpu.memory_space<vmem>>, %arg4: memref<128x32xbf16, #tpu.memory_space<vmem>>, %arg5: memref<1x32xf32, #tpu.memory_space<vmem>>, %arg6: memref<16x32xf32, #tpu.memory_space<vmem>>, %arg7: memref<16x32xf32, #tpu.memory_space<vmem>>, %arg8: memref<16x32xf32, #tpu.memory_space<vmem>>) attributes {dimension_semantics = [#tpu.dimension_semantics<parallel>, #tpu.dimension_semantics<parallel>, #tpu.dimension_semantics<arbitrary>], iteration_bounds = array<i64: 1, 1, 1>, scalar_prefetch = 0 : i64, scratch_operands = 1 : i64, tpu.core_type = #tpu.core_type<tc>, window_params = [{transform_indices = @transform_0, window_bounds = array<i64: 16, 128>}, {transform_indices = @transform_1, window_bounds = array<i64: 128, 32>}, {transform_indices = @transform_2, window_bounds = array<i64: 1, 32>}, {transform_indices = @transform_3, window_bounds = array<i64: 16, 32>}, {transform_indices = @transform_4, window_bounds = array<i64: 16, 32>}]} {
    %c0_i32 = arith.constant 0 : i32
    %0 = arith.cmpi eq, %arg2, %c0_i32 : i32
    %1 = arith.extui %0 : i1 to i32
    %c0_i32_0 = arith.constant 0 : i32
    %2 = arith.cmpi ne, %1, %c0_i32_0 : i32
    scf.if %2 {
      %cst_10 = arith.constant 0.000000e+00 : f32
      %12 = vector.broadcast %cst_10 : f32 to vector<16x32xf32>
      %c0_11 = arith.constant 0 : index
      %c0_12 = arith.constant 0 : index
      %13 = vector.load %arg8[%c0_11, %c0_12] : memref<16x32xf32, #tpu.memory_space<vmem>>, vector<16x32xf32>
      tpu.vector_store %arg8[%c0_11, %c0_12], %12 {strides = array<i32>} : memref<16x32xf32, #tpu.memory_space<vmem>>, vector<16x32xf32>,
    } else {
    }
    %c0 = arith.constant 0 : index
    %c0_1 = arith.constant 0 : index
    %3 = vector.load %arg8[%c0, %c0_1] : memref<16x32xf32, #tpu.memory_space<vmem>>, vector<16x32xf32>
    %c0_2 = arith.constant 0 : index
    %c0_3 = arith.constant 0 : index
    %4 = vector.load %arg3[%c0_2, %c0_3] : memref<16x128xbf16, #tpu.memory_space<vmem>>, vector<16x128xbf16>
    %c0_4 = arith.constant 0 : index
    %c0_5 = arith.constant 0 : index
    %5 = vector.load %arg4[%c0_4, %c0_5] : memref<128x32xbf16, #tpu.memory_space<vmem>>, vector<128x32xbf16>
    %cst = arith.constant dense<0.000000e+00> : vector<16x32xf32>
    %6 = tpu.matmul %4, %5, %cst {dimension_numbers = #tpu.dot_dimension_numbers<[1], [0], [0], [1], [0, 0, 1, 1], [], []>} : vector<16x128xbf16>, vector<128x32xbf16>, vector<16x32xf32> -> vector<16x32xf32>
    %7 = arith.addf %3, %6 : vector<16x32xf32>
    %c0_6 = arith.constant 0 : index
    %c0_7 = arith.constant 0 : index
    %8 = vector.load %arg8[%c0_6, %c0_7] : memref<16x32xf32, #tpu.memory_space<vmem>>, vector<16x32xf32>
    tpu.vector_store %arg8[%c0_6, %c0_7], %7 {strides = array<i32>} : memref<16x32xf32, #tpu.memory_space<vmem>>, vector<16x32xf32>,
    %c0_i32_8 = arith.constant 0 : i32
    %9 = arith.cmpi eq, %arg2, %c0_i32_8 : i32
    %10 = arith.extui %9 : i1 to i32
    %c0_i32_9 = arith.constant 0 : i32
    %11 = arith.cmpi ne, %10, %c0_i32_9 : i32
    scf.if %11 {
      %c0_10 = arith.constant 0 : index
      %c0_11 = arith.constant 0 : index
      %12 = vector.load %arg8[%c0_10, %c0_11] : memref<16x32xf32, #tpu.memory_space<vmem>>, vector<16x32xf32>
      %c0_12 = arith.constant 0 : index
      %c0_13 = arith.constant 0 : index
      %13 = vector.load %arg5[%c0_12, %c0_13] : memref<1x32xf32, #tpu.memory_space<vmem>>, vector<1x32xf32>
      %14 = vector.broadcast %13 : vector<1x32xf32> to vector<16x32xf32>
      %15 = arith.addf %12, %14 : vector<16x32xf32>
      %cst_14 = arith.constant 0.707106769 : f32
      %16 = vector.broadcast %cst_14 : f32 to vector<16x32xf32>
      %17 = arith.mulf %15, %16 : vector<16x32xf32>
      %18 = math.absf %17 : vector<16x32xf32>
      %cst_15 = arith.constant 0.327591091 : f32
      %19 = vector.broadcast %cst_15 : f32 to vector<16x32xf32>
      %20 = arith.mulf %19, %18 : vector<16x32xf32>
      %cst_16 = arith.constant 1.000000e+00 : f32
      %21 = vector.broadcast %cst_16 : f32 to vector<16x32xf32>
      %22 = arith.addf %21, %20 : vector<16x32xf32>
      %23 = tpu.reciprocal %22 {approx = true} : vector<16x32xf32> -> vector<16x32xf32>
      %cst_17 = arith.constant 1.06140542 : f32
      %24 = vector.broadcast %cst_17 : f32 to vector<16x32xf32>
      %25 = arith.mulf %24, %23 : vector<16x32xf32>
      %cst_18 = arith.constant -1.45315206 : f32
      %26 = vector.broadcast %cst_18 : f32 to vector<16x32xf32>
      %27 = arith.addf %25, %26 : vector<16x32xf32>
      %28 = arith.mulf %27, %23 : vector<16x32xf32>
      %cst_19 = arith.constant 1.42141378 : f32
      %29 = vector.broadcast %cst_19 : f32 to vector<16x32xf32>
      %30 = arith.addf %28, %29 : vector<16x32xf32>
      %31 = arith.mulf %30, %23 : vector<16x32xf32>
      %cst_20 = arith.constant -0.284496725 : f32
      %32 = vector.broadcast %cst_20 : f32 to vector<16x32xf32>
      %33 = arith.addf %31, %32 : vector<16x32xf32>
      %34 = arith.mulf %33, %23 : vector<16x32xf32>
      %cst_21 = arith.constant 0.254829586 : f32
      %35 = vector.broadcast %cst_21 : f32 to vector<16x32xf32>
      %36 = arith.addf %34, %35 : vector<16x32xf32>
      %37 = arith.mulf %36, %23 : vector<16x32xf32>
      %cst_22 = arith.constant 0.000000e+00 : f32
      %38 = vector.broadcast %cst_22 : f32 to vector<16x32xf32>
      %39 = arith.subf %38, %18 : vector<16x32xf32>
      %40 = arith.mulf %39, %18 : vector<16x32xf32>
      %41 = math.exp %40 : vector<16x32xf32>
      %42 = arith.mulf %37, %41 : vector<16x32xf32>
      %cst_23 = arith.constant 1.000000e+00 : f32
      %43 = vector.broadcast %cst_23 : f32 to vector<16x32xf32>
      %44 = arith.subf %43, %42 : vector<16x32xf32>
      %cst_24 = arith.constant 0.000000e+00 : f32
      %45 = vector.broadcast %cst_24 : f32 to vector<16x32xf32>
      %46 = arith.cmpf oge, %17, %45 : vector<16x32xf32>
      %cst_25 = arith.constant 0.000000e+00 : f32
      %47 = vector.broadcast %cst_25 : f32 to vector<16x32xf32>
      %48 = arith.subf %47, %44 : vector<16x32xf32>
      %49 = arith.select %46, %44, %48 : vector<16x32xi1>, vector<16x32xf32>
      %cst_26 = arith.constant 5.000000e-01 : f32
      %50 = vector.broadcast %cst_26 : f32 to vector<16x32xf32>
      %51 = arith.mulf %50, %15 : vector<16x32xf32>
      %cst_27 = arith.constant 1.000000e+00 : f32
      %52 = vector.broadcast %cst_27 : f32 to vector<16x32xf32>
      %53 = arith.addf %52, %49 : vector<16x32xf32>
      %54 = arith.mulf %51, %53 : vector<16x32xf32>
      %c0_28 = arith.constant 0 : index
      %c0_29 = arith.constant 0 : index
      %55 = vector.load %arg6[%c0_28, %c0_29] : memref<16x32xf32, #tpu.memory_space<vmem>>, vector<16x32xf32>
      %56 = arith.addf %54, %55 : vector<16x32xf32>
      %c0_30 = arith.constant 0 : index
      %c0_31 = arith.constant 0 : index
      %57 = vector.load %arg7[%c0_30, %c0_31] : memref<16x32xf32, #tpu.memory_space<vmem>>, vector<16x32xf32>
      tpu.vector_store %arg7[%c0_30, %c0_31], %56 {strides = array<i32>} : memref<16x32xf32, #tpu.memory_space<vmem>>, vector<16x32xf32>,
    } else {
    }
    return
  }
  func.func @transform_0(%arg0: i32, %arg1: i32, %arg2: i32) -> (i32, i32) {
    %c0_i32 = arith.constant 0 : i32
    return %arg0, %arg2 : i32, i32
  }
  func.func @transform_1(%arg0: i32, %arg1: i32, %arg2: i32) -> (i32, i32) {
    %c0_i32 = arith.constant 0 : i32
    return %arg2, %arg1 : i32, i32
  }
  func.func @transform_2(%arg0: i32, %arg1: i32, %arg2: i32) -> (i32, i32) {
    %c0_i32 = arith.constant 0 : i32
    %c0_i32_0 = arith.constant 0 : i32
    return %c0_i32, %arg1 : i32, i32
  }
  func.func @transform_3(%arg0: i32, %arg1: i32, %arg2: i32) -> (i32, i32) {
    %c0_i32 = arith.constant 0 : i32
    return %arg0, %arg1 : i32, i32
  }
  func.func @transform_4(%arg0: i32, %arg1: i32, %arg2: i32) -> (i32, i32) {
    %c0_i32 = arith.constant 0 : i32
    return %arg0, %arg1 : i32, i32
  }
}

</mosaic_0001>

<bundles_post_ra>
// kernel: gpt_forward.20
= control target key start
LH: loop header
LB: loop body
LE: loop exit
PB: predicated region body
PF: predicated region fallthrough
CT: control target
= control target key end

     0   :  { %vm16_vm0 = vcmask 261120   ;;  %vm70_vm1 = vcmask 257024   ;;  %s129_s0 = inlined_call_operand.vmem [shape: f32[16,32], index: 0, kind: input, shape index: {}]   ;;  %s130_s1 = inlined_call_operand.vmem [shape: f32[1,32], index: 1, kind: input, shape index: {}]   ;;  %s131_s2 = inlined_call_operand.vmem [shape: f32[1,32], index: 2, kind: input, shape index: {}]   ;;  %s132_s3 = inlined_call_operand.vmem [shape: bf16[16,32], index: 3, kind: output, shape index: {}]  }
   0x1   :  { %v14_v0 = vld [vmem:[%s129_s0] sm:$0xff]  ;;  %v15_v1 = vld [vmem:[%s129_s0 + $0x8] sm:$0xff] }
   0x2   :  { %v17_v2 = vsel %vm16_vm0, %v14_v0, 0.0  ;;  %v20_v3 = vsel %vm16_vm0, %v15_v1, 0.0  ;;  %v77_v21 = vld [vmem:[%s130_s1] ss:$0 sm:$0xff] }
   0x3   :  { %18 = vadd.xlane.f32.xlu0 %v17_v2  ;;  %v78_v23 = vld [vmem:[%s131_s2] ss:$0 sm:$0xff] }
   0x7   :  { %21 = vadd.xlane.f32.xlu0 %v20_v3 }
  0x90   :  { %v19_v4 = vpop.xlane.xlu0 %18 }
  0x91   :  { %v24_v5 = vmul.f32 0.03125, %v19_v4 }
  0x93   :  { %v26_v6 = vsub.f32 %v14_v0, %v24_v5 }
  0x94   :  { %v22_v7 = vpop.xlane.xlu0 %21 }
  0x95   :  { %v25_v8 = vmul.f32 0.03125, %v22_v7  ;;  %v28_v9 = vmul.f32 %v26_v6, %v26_v6 }
  0x97   :  { %v27_v10 = vsub.f32 %v15_v1, %v25_v8  ;;  %v30_v11 = vsel %vm16_vm0, %v28_v9, 0.0 }
  0x98   :  { %31 = vadd.xlane.f32.xlu1 %v30_v11 }
  0x99   :  { %v29_v12 = vmul.f32 %v27_v10, %v27_v10 }
  0x9b   :  { %v33_v13 = vsel %vm16_vm0, %v29_v12, 0.0 }
  0x9c   :  { %34 = vadd.xlane.f32.xlu1 %v33_v13 }
 0x125   :  { %v32_v14 = vpop.xlane.xlu1 %31 }
 0x126   :  { %v36_v15 = vmul.f32 0.03125, %v32_v14 }
 0x128   :  { %v38_v16 = vadd.f32 1e-05, %v36_v15 }
 0x129   :  { %v35_v17 = vpop.xlane.xlu1 %34 }
 0x12a   :  { %83 = vrsqrt.f32 %v38_v16  ;;  %v37_v18 = vmul.f32 0.03125, %v35_v17 }
 0x12c   :  { %v39_v19 = vadd.f32 1e-05, %v37_v18 }
 0x12e   :  { %85 = vrsqrt.f32 %v39_v19 }
 0x134   :  { %v84_v20 = vpop.eup %83 }
 0x135   :  { %v43_v22 = vmul.f32 %v84_v20, %v26_v6 }
 0x137   :  { %v51_v24 = vmul.f32 %v77_v21, %v43_v22 }
 0x138   :  { %v86_v25 = vpop.eup %85 }
 0x139   :  { %v60_v26 = vadd.f32 %v78_v23, %v51_v24  ;;  %v44_v27 = vmul.f32 %v86_v25, %v27_v10 }
 0x13b   :  { %v81_v28 = vpack.c.bf16 %v60_v26, %v60_v26  ;;  %v52_v29 = vmul.f32 %v77_v21, %v44_v27 }
 0x13d   :  { %71 = vst.msk [vmem:[%s132_s3] sm:$0xf] %vm70_vm1, %v81_v28  ;;  %v61_v30 = vadd.f32 %v78_v23, %v52_v29 }
 0x13f   :  { %v82_v31 = vpack.c.bf16 %v61_v30, %v61_v30 }
 0x141   :  { %72 = vst.msk [vmem:[%s132_s3 + $0x4] sm:$0xf] %vm70_vm1, %v82_v31 }

// kernel: gpt_forward.23
= control target key start
LH: loop header
LB: loop body
LE: loop exit
PB: predicated region body
PF: predicated region fallthrough
CT: control target
= control target key end

     0   :  { %vm19_vm0 = vcmask 261120   ;;  %v150_v0 = vmov 0.0   ;;  %vm151_vm1 = vmmov 0   ;;  %vm118_vm2 = vcmask 257024   ;;  %s195_s1 = inlined_call_operand.vmem [shape: bf16[32,32], index: 1, kind: input, shape index: {}]   ;;  %s196_s0 = inlined_call_operand.vmem [shape: bf16[16,32], index: 0, kind: input, shape index: {}]   ;;  %s197_s2 = inlined_call_operand.vmem [shape: f32[1,32], index: 2, kind: input, shape index: {}]   ;;  %s198_s3 = inlined_call_operand.vmem [shape: bf16[16,32], index: 3, kind: output, shape index: {}]  }
   0x1   :  { %137 = vmatprep.subr.bf16.mxu0 %v150_v0  ;;  %v147_v1 = vld [vmem:[%s195_s1] sm:$0xff]   ;;  %141 = vmatprep.mubr.msk.bf16.mxu0 %vm151_vm1, %v150_v0  ;;  %20 = vst.msk [vmem:[#allocation2] sm:$0xff] %vm19_vm0, %v150_v0  ;;  %21 = vst.msk [vmem:[#allocation2 + $0x8] sm:$0xff] %vm19_vm0, %v150_v0  ;;  %v148_v2 = vld [vmem:[%s195_s1 + $0x8] sm:$0xff]  }
   0x2   :  { %138 = vmatpush3.bf16.msra.mxu0 %v147_v1  ;;  %v149_v3 = vld [vmem:[%s196_s0] sm:$0xff]  }
   0x3   :  { %139 = vmatprep.subr.bf16.mxu0 %v150_v0  ;;  %v129_v12 = vld [vmem:[%s197_s2] ss:$0 sm:$0xff] }
   0x6   :  { %140 = vmatpush3.bf16.msra.mxu0 %v148_v2 }
   0x8   :  { %v22_v4 = vld [vmem:[#allocation2] sm:$0xff]  ;;  %v23_v6 = vld [vmem:[#allocation2 + $0x8] sm:$0xff] }
   0x9   :  { %142 = vmatmul.mubr.msk.bf16.vlgmr.msra.gmra.mrb[0].mxu0 %vm19_vm0, %v149_v3 }
  0xdc   :  { %v85_v5 = vpop.f32.mrb[0].mxu0 }
  0xdd   :  { %v92_v7 = vadd.f32 %v85_v5, %v22_v4  ;;  %v143_v8 = vpop.f32.mrb[1].mxu0 }
  0xde   :  { %v88_v9 = vpop.f32.mrb[2].mxu0 }
  0xdf   :  { %94 = vst.msk [vmem:[#allocation2] sm:$0xff] %vm19_vm0, %v92_v7  ;;  %v93_v10 = vadd.f32 %v88_v9, %v23_v6  ;;  %v144_v11 = vpop.f32.mrb[3].mxu0 }
  0xe1   :  { %95 = vst.msk [vmem:[#allocation2 + $0x8] sm:$0xff] %vm19_vm0, %v93_v10 }
  0xe6   :  { %v99_v13 = vld [vmem:[#allocation2] sm:$0xff] }
  0xe7   :  { %v108_v14 = vadd.f32 %v129_v12, %v99_v13 }
  0xe8   :  { %v100_v15 = vld [vmem:[#allocation2 + $0x8] sm:$0xff] }
  0xe9   :  { %v132_v16 = vpack.c.bf16 %v108_v14, %v108_v14  ;;  %v109_v17 = vadd.f32 %v129_v12, %v100_v15 }
  0xeb   :  { %119 = vst.msk [vmem:[%s198_s3] sm:$0xf] %vm118_vm2, %v132_v16  ;;  %v133_v18 = vpack.c.bf16 %v109_v17, %v109_v17 }
  0xed   :  { %120 = vst.msk [vmem:[%s198_s3 + $0x4] sm:$0xf] %vm118_vm2, %v133_v18 }

// kernel: gpt_forward.25
= control target key start
LH: loop header
LB: loop body
LE: loop exit
PB: predicated region body
PF: predicated region fallthrough
CT: control target
= control target key end

     0   :  { %vm22_vm0 = vcmask 261120   ;;  %v144_v0 = vmov 0.0   ;;  %vm145_vm1 = vmmov 0   ;;  %s202_s1 = inlined_call_operand.vmem [shape: bf16[32,32], index: 1, kind: input, shape index: {}]   ;;  %s203_s0 = inlined_call_operand.vmem [shape: bf16[16,32], index: 0, kind: input, shape index: {}]   ;;  %s204_s2 = inlined_call_operand.vmem [shape: f32[1,32], index: 2, kind: input, shape index: {}]   ;;  %s205_s3 = inlined_call_operand.vmem [shape: f32[16,32], index: 3, kind: input, shape index: {}]   ;;  %s206_s4 = inlined_call_operand.vmem [shape: f32[16,32], index: 4, kind: output, shape index: {}]  }
   0x1   :  { %131 = vmatprep.subr.bf16.mxu0 %v144_v0  ;;  %v141_v1 = vld [vmem:[%s202_s1] sm:$0xff]   ;;  %135 = vmatprep.mubr.msk.bf16.mxu0 %vm145_vm1, %v144_v0  ;;  %23 = vst.msk [vmem:[#allocation2] sm:$0xff] %vm22_vm0, %v144_v0  ;;  %24 = vst.msk [vmem:[#allocation2 + $0x8] sm:$0xff] %vm22_vm0, %v144_v0  ;;  %v142_v2 = vld [vmem:[%s202_s1 + $0x8] sm:$0xff]  }
   0x2   :  { %132 = vmatpush3.bf16.msra.mxu0 %v141_v1  ;;  %v143_v3 = vld [vmem:[%s203_s0] sm:$0xff]   ;;  %v114_v17 = vld [vmem:[%s205_s3 + $0x8] sm:$0xff] }
   0x3   :  { %133 = vmatprep.subr.bf16.mxu0 %v144_v0  ;;  %v127_v12 = vld [vmem:[%s204_s2] ss:$0 sm:$0xff] }
   0x4   :  { %v113_v14 = vld [vmem:[%s205_s3] sm:$0xff] }
   0x6   :  { %134 = vmatpush3.bf16.msra.mxu0 %v142_v2 }
   0x8   :  { %v25_v4 = vld [vmem:[#allocation2] sm:$0xff]  ;;  %v26_v6 = vld [vmem:[#allocation2 + $0x8] sm:$0xff] }
   0x9   :  { %136 = vmatmul.mubr.msk.bf16.vlgmr.msra.gmra.mrb[0].mxu0 %vm22_vm0, %v143_v3 }
  0xdc   :  { %v88_v5 = vpop.f32.mrb[0].mxu0 }
  0xdd   :  { %v95_v7 = vadd.f32 %v88_v5, %v25_v4  ;;  %v137_v8 = vpop.f32.mrb[1].mxu0 }
  0xde   :  { %v91_v9 = vpop.f32.mrb[2].mxu0 }
  0xdf   :  { %97 = vst.msk [vmem:[#allocation2] sm:$0xff] %vm22_vm0, %v95_v7  ;;  %v96_v10 = vadd.f32 %v91_v9, %v26_v6  ;;  %v138_v11 = vpop.f32.mrb[3].mxu0 }
  0xe1   :  { %98 = vst.msk [vmem:[#allocation2 + $0x8] sm:$0xff] %vm22_vm0, %v96_v10 }
  0xe6   :  { %v102_v13 = vld [vmem:[#allocation2] sm:$0xff] }
  0xe7   :  { %v111_v15 = vadd.f32 %v127_v12, %v102_v13 }
  0xe8   :  { %v103_v16 = vld [vmem:[#allocation2 + $0x8] sm:$0xff] }
  0xe9   :  { %v115_v18 = vadd.f32 %v113_v14, %v111_v15  ;;  %v112_v19 = vadd.f32 %v127_v12, %v103_v16 }
  0xeb   :  { %117 = vst.msk [vmem:[%s206_s4] sm:$0xff] %vm22_vm0, %v115_v18  ;;  %v116_v20 = vadd.f32 %v114_v17, %v112_v19 }
  0xed   :  { %118 = vst.msk [vmem:[%s206_s4 + $0x8] sm:$0xff] %vm22_vm0, %v116_v20 }

// kernel: gpt_forward.39
= control target key start
LH: loop header
LB: loop body
LE: loop exit
PB: predicated region body
PF: predicated region fallthrough
CT: control target
= control target key end

     0   :  { %v165_v1 = vmov 0.0   ;;  %vm166_vm0 = vmmov 0   ;;  %vm17_vm1 = vcmask 523264   ;;  %s212_s0 = inlined_call_operand.vmem [shape: bf16[16,32], index: 0, kind: input, shape index: {}]   ;;  %s213_s1 = inlined_call_operand.vmem [shape: bf16[32,64], index: 1, kind: input, shape index: {}]   ;;  %s214_s2 = inlined_call_operand.hbm [shape: f32[16,64], index: 2, kind: output, shape index: {}]  }
   0x1   :  { %v138_v0 = vld [vmem:[%s213_s1] sm:$0xff]   ;;  %125 = vmatprep.subr.bf16.mxu0 %v165_v1  ;;  %v139_v2 = vld [vmem:[%s213_s1 + $0x8] sm:$0xff]   ;;  %129 = vmatprep.mubr.msk.bf16.mxu0 %vm166_vm0, %v165_v1 }
   0x2   :  { %126 = vmatpush3.bf16.msra.mxu0 %v138_v0 }
   0x3   :  { %127 = vmatprep.subr.bf16.mxu0 %v165_v1 }
   0x4   :  { %7 = vsyncpa [#allocation4], 0  ;;  %18 = vst.msk [vmem:[#allocation2] sm:$0xff] %vm17_vm1, %v165_v1  ;;  %v140_v3 = vld [vmem:[%s212_s0] sm:$0xff]   ;;  %vm45_vm2 = vcmask 261120   ;;  %s167_s1 = smov [#allocation3]  }
   0x5   :  { %19 = vst.msk [vmem:[#allocation2 + $0x8] sm:$0xff] %vm17_vm1, %v165_v1  ;;  %s107_s15 = sshll.u32 %s167_s1, 4  ;;  %s108_s15 = int_to_ptr.vmem [resolvable:$true] %s107_s15 }
   0x6   :  { %128 = vmatpush3.bf16.msra.mxu0 %v139_v2  ;;  %s141_s0 = scalar_lea.vmem %s108_s15, 256  ;;  %p146_p1 = scmp.lt.s32.totalorder %s108_s15, %s108_s15 }
   0x7   :  { %p142_p0 = scmp.ne.s32.totalorder %s108_s15, %s141_s0  ;;  %p147_p2 = scmp.lt.s32.totalorder %s141_s0, %s141_s0 }
   0x9   :  { %130 = vmatmul.mubr.msk.bf16.vlgmr.msra.gmra.mrb[0].mxu0 %vm45_vm2, %v140_v3  ;;  %p148_p3 = por %p147_p2, %p146_p1 }
   0xb   :  { %v20_v4 = vld [vmem:[#allocation2] sm:$0xff]  ;;  %p149_p4 = pnand %p148_p3, %p142_p0 }
   0xc   :  { %v21_v6 = vld [vmem:[#allocation2 + $0x8] sm:$0xff] }
  0xdc   :  { %v83_v5 = vpop.f32.mrb[0].mxu0 }
  0xdd   :  { %v90_v7 = vadd.f32 %v83_v5, %v20_v4  ;;  %v131_v8 = vpop.f32.mrb[1].mxu0 }
  0xde   :  { %v86_v9 = vpop.f32.mrb[2].mxu0 }
  0xdf   :  { %93 = vst.msk [vmem:[#allocation2] sm:$0xff] %vm17_vm1, %v90_v7  ;;  %v91_v10 = vadd.f32 %v86_v9, %v21_v6  ;;  %v132_v11 = vpop.f32.mrb[3].mxu0 }
  0xe1   :  { %94 = vst.msk [vmem:[#allocation2 + $0x8] sm:$0xff] %vm17_vm1, %v91_v10 }
  0xe6   :  { %v98_v12 = vld [vmem:[#allocation2] sm:$0xff] }
  0xe7   :  { %100 = vst.msk [vmem:[#allocation3] sm:$0xff] %vm17_vm1, %v98_v12 }
  0xe8   :  { %v99_v13 = vld [vmem:[#allocation2 + $0x8] sm:$0xff] }
  0xe9   :  { %101 = vst.msk [vmem:[#allocation3 + $0x8] sm:$0xff] %vm17_vm1, %v99_v13 }
  0xea   :  { %152 = shalt.err (!%p149_p4)
}
  0xeb   :  { %s153_s18 = scalar_lea.hbm %s214_s2, 256 }
  0xec   :  { %p154_p5 = scmp.ne.s32.totalorder %s214_s2, %s153_s18  ;;  %p157_p6 = scmp.lt.u32.totalorder %s153_s18, %s214_s2 }
  0xee   :  { %p159_p7 = pnand %p157_p6, %p154_p5 }
  0xf0   :  { %162 = shalt.err (!%p159_p7)
}
  0xf1   :  { %s168_s23 = smov 128   ;;  %s169_s24 = smov 8  }
  0xf2   :  { %113 = dma.vmem_to_hbm [thread:$0]  %s108_s15, 256, %s214_s2, [#allocation4], %s168_s23, %s168_s23, %s169_s24  }
  0xf3   :  { %163 = dma.done.wait [#allocation4], 256  }
  0xf4   :  { %164 = vsyncadd [#allocation4], 4294967040 }
  0xf5   :  { %117 = vsyncpa [#allocation4], 1 }

// kernel: gpt_forward.27
= control target key start
LH: loop header
LB: loop body
LE: loop exit
PB: predicated region body
PF: predicated region fallthrough
CT: control target
= control target key end

     0   :  { %v213_v0 = vmov 0.0   ;;  %vm214_vm0 = vmmov 0   ;;  %vm46_vm1 = vcmask 261120   ;;  %s250_s1 = inlined_call_operand.vmem [shape: bf16[32,128], index: 1, kind: input, shape index: {}]   ;;  %s251_s0 = inlined_call_operand.vmem [shape: bf16[16,32], index: 0, kind: input, shape index: {}]   ;;  %s252_s2 = inlined_call_operand.vmem [shape: f32[1,128], index: 2, kind: input, shape index: {}]   ;;  %s253_s3 = inlined_call_operand.vmem [shape: bf16[16,128], index: 3, kind: output, shape index: {}]  }
   0x1   :  { %192 = vmatprep.subr.bf16.mxu0 %v213_v0  ;;  %v202_v1 = vld [vmem:[%s250_s1] sm:$0xff]   ;;  %196 = vmatprep.mubr.msk.bf16.mxu0 %vm214_vm0, %v213_v0  ;;  %v203_v2 = vld [vmem:[%s250_s1 + $0x8] sm:$0xff]  }
   0x2   :  { %193 = vmatpush3.bf16.msra.mxu0 %v202_v1  ;;  %v204_v3 = vld [vmem:[%s251_s0] sm:$0xff]  }
   0x3   :  { %194 = vmatprep.subr.bf16.mxu0 %v213_v0  ;;  %v179_v4 = vld [vmem:[%s252_s2] ss:$0 sm:$0xff] }
   0x6   :  { %195 = vmatpush3.bf16.msra.mxu0 %v203_v2 }
   0x9   :  { %197 = vmatmul.mubr.msk.bf16.vlgmr.msra.gmra.mrb[0].mxu0 %vm46_vm1, %v204_v3 }
  0xdc   :  { %v84_v5 = vpop.f32.mrb[0].mxu0 }
  0xdd   :  { %v107_v6 = vadd.f32 %v179_v4, %v84_v5  ;;  %v198_v7 = vpop.f32.mrb[1].mxu0 }
  0xde   :  { %v87_v8 = vpop.f32.mrb[2].mxu0 }
  0xdf   :  { %v109_v9 = vmul.f32 0.70710677, %v107_v6  ;;  %v108_v10 = vadd.f32 %v179_v4, %v87_v8  ;;  %v199_v11 = vpop.f32.mrb[3].mxu0  ;;  %v155_v56 = vmul.f32 0.5, %v107_v6 }
  0xe1   :  { %v111_v12 = vand.u32 2147483647, %v109_v9  ;;  %v110_v13 = vmul.f32 0.70710677, %v108_v10  ;;  %vm149_vm2 = vcmp.ge.f32.partialorder %v109_v9, 0.0  ;;  %v156_v57 = vmul.f32 0.5, %v108_v10 }
  0xe3   :  { %v113_v14 = vmul.f32 0.3275911, %v111_v12  ;;  %v112_v15 = vand.u32 2147483647, %v110_v13  ;;  %v137_v19 = vsub.f32 0.0, %v111_v12  ;;  %vm150_vm3 = vcmp.ge.f32.partialorder %v110_v13, 0.0 }
  0xe5   :  { %v115_v16 = vadd.f32 1.0, %v113_v14  ;;  %v114_v17 = vmul.f32 0.3275911, %v112_v15  ;;  %v138_v20 = vsub.f32 0.0, %v112_v15  ;;  %v139_v22 = vmul.f32 %v137_v19, %v111_v12 }
  0xe7   :  { %205 = vrcp.f32 %v115_v16  ;;  %v116_v18 = vadd.f32 1.0, %v114_v17  ;;  %v140_v26 = vmul.f32 %v138_v20, %v112_v15  ;;  %v141_v27 = vmul.f32 1.442695, %v139_v22 }
  0xe9   :  { %207 = vrcp.f32 %v116_v18  ;;  %v143_v32 = vmul.f32 1.442695, %v140_v26 }
  0xea   :  { %209 = vpow2.f32 %v141_v27 }
  0xeb   :  { %211 = vpow2.f32 %v143_v32 }
  0xf1   :  { %v206_v21 = vpop.eup %205 }
  0xf2   :  { %v119_v23 = vmul.f32 1.0614054, %v206_v21 }
  0xf3   :  { %v208_v24 = vpop.eup %207 }
  0xf4   :  { %v121_v25 = vadd.f32 -1.4531521, %v119_v23  ;;  %v120_v28 = vmul.f32 1.0614054, %v208_v24  ;;  %v210_v43 = vpop.eup %209 }
  0xf5   :  { %v212_v47 = vpop.eup %211 }
  0xf6   :  { %v123_v29 = vmul.f32 %v206_v21, %v121_v25  ;;  %v122_v30 = vadd.f32 -1.4531521, %v120_v28 }
  0xf8   :  { %v125_v31 = vadd.f32 1.4214138, %v123_v29  ;;  %v124_v33 = vmul.f32 %v208_v24, %v122_v30 }
  0xfa   :  { %v127_v34 = vmul.f32 %v206_v21, %v125_v31  ;;  %v126_v35 = vadd.f32 1.4214138, %v124_v33 }
  0xfc   :  { %v129_v36 = vadd.f32 -0.28449672, %v127_v34  ;;  %v128_v37 = vmul.f32 %v208_v24, %v126_v35 }
  0xfe   :  { %v131_v38 = vmul.f32 %v206_v21, %v129_v36  ;;  %v130_v39 = vadd.f32 -0.28449672, %v128_v37 }
 0x100   :  { %v133_v40 = vadd.f32 0.2548296, %v131_v38  ;;  %v132_v41 = vmul.f32 %v208_v24, %v130_v39 }
 0x102   :  { %v135_v42 = vmul.f32 %v206_v21, %v133_v40  ;;  %v134_v44 = vadd.f32 0.2548296, %v132_v41 }
 0x104   :  { %v145_v45 = vmul.f32 %v210_v43, %v135_v42  ;;  %v136_v46 = vmul.f32 %v208_v24, %v134_v44 }
 0x106   :  { %v147_v48 = vsub.f32 1.0, %v145_v45  ;;  %v146_v49 = vmul.f32 %v212_v47, %v136_v46 }
 0x108   :  { %v151_v50 = vsub.f32 0.0, %v147_v48  ;;  %v148_v51 = vsub.f32 1.0, %v146_v49 }
 0x10a   :  { %v153_v52 = vsel %vm149_vm2, %v147_v48, %v151_v50  ;;  %v152_v53 = vsub.f32 0.0, %v148_v51 }
 0x10b   :  { %v157_v54 = vadd.f32 1.0, %v153_v52 }
 0x10c   :  { %v154_v55 = vsel %vm150_vm3, %v148_v51, %v152_v53 }
 0x10d   :  { %v158_v58 = vadd.f32 1.0, %v154_v55  ;;  %v159_v59 = vmul.f32 %v157_v54, %v155_v56 }
 0x10f   :  { %v160_v60 = vmul.f32 %v158_v58, %v156_v57 }
 0x111   :  { %v187_v61 = vpack.c.bf16 %v160_v60, %v159_v59 }
 0x113   :  { %188 = vst [vmem:[%s253_s3] sm:$0xff] %v187_v61  }

// kernel: gpt_forward.24
= control target key start
LH: loop header
LB: loop body
LE: loop exit
PB: predicated region body
PF: predicated region fallthrough
CT: control target
= control target key end

     0   :  { %s1817_s12 = smov 0   ;;  %s1819_s13 = smov 0   ;;  %s1999_s0 = inlined_call_operand.vmem [shape: bf16[2,8,32], index: 0, kind: input, shape index: {}]   ;;  %s2000_s1 = inlined_call_operand.vmem [shape: bf16[2,8,32], index: 1, kind: input, shape index: {}]   ;;  %s2001_s2 = inlined_call_operand.vmem [shape: bf16[2,8,32], index: 2, kind: input, shape index: {}]   ;;  %s2002_s3 = inlined_call_operand.vmem [shape: bf16[2,8,32], index: 3, kind: output, shape index: {}]  }
   0x1   :  { %s1821_s14 = smov 0  }
   0x2 LB: > { %s32_s15 = sadd.s32 1, %s1781_s13  ;;  %p1608_p0 = scmp.ge.s32.totalorder %s1785_s14, 1  ;;  %s1785_s14 = sphi %s1821_s14, %s13_s14   ;;  %s1781_s13 = sphi %s1819_s13, %s2004_s13   ;;  %s1777_s12 = sphi %s1817_s12, %s2003_s12  }
   0x3   : > { %p34_p1 = scmp.ge.s32.totalorder %s32_s15, 2  ;;  %p206_p2 = scmp.lt.s32.totalorder %s1785_s14, 3 }
   0x5   : > { %s2006_s15 = smov (%p34_p1, %s32_s15), 0  ;;  %p207_p3 = pnand %p1608_p0, %p206_p2 }
   0x6   : > { %p252_p4 = scmp.lt.s32.totalorder (!%p207_p3), %s1777_s12, 1  ;;  %vm303_vm0 = vcmask (!%p207_p3), 64512   ;;  %v1787_v0 = vmov (!%p207_p3), 0.0   ;;  %vm1788_vm1 = vmmov (!%p207_p3), 0   ;;  %vm294_vm2 = vcmask (!%p207_p3), 7168   ;;  %s1791_s23 = smov (!%p207_p3), 120  }
   0x7   : > { %210 = sbr.rel (%p207_p3) target bundleno = 1467 (0x5bb), region = 32  ;;  %1653 = vmatprep.subr.bf16.mxu0 (!%p207_p3), %v1787_v0  ;;  %304 = vst.msk [vmem:[#allocation4] sm:$0xff] (!%p207_p3), %vm303_vm0, %v1787_v0  ;;  %305 = vst.msk [vmem:[#allocation4 + $0x8] sm:$0xff] (!%p207_p3), %vm303_vm0, %v1787_v0  ;;  %1655 = vmatprep.mubr.msk.bf16.mxu0 (!%p207_p3), %vm1788_vm1, %v1787_v0  ;;  %v1789_v5 = vmov (!%p207_p3), -1e+30   ;;  %v873_v6 = vlaneseq (!%p207_p3)  ;;  %v1790_v15 = vmov (!%p207_p3), 0  }
   0x8   : > { %306 = vst.msk [vmem:[#allocation4 + $0x10] sm:$0xff] (!%p207_p3), %vm303_vm0, %v1787_v0  ;;  %307 = vst.msk [vmem:[#allocation4 + $0x18] sm:$0xff] (!%p207_p3), %vm303_vm0, %v1787_v0  ;;  %1659 = vmatprep.subr.bf16.mxu1 (!%p207_p3), %v1787_v0  ;;  %1661 = vmatprep.mubr.msk.bf16.mxu1 (!%p207_p3), %vm1788_vm1, %v1787_v0  ;;  %s1792_s24 = smov (!%p207_p3), 112   ;;  %s1793_s25 = smov (!%p207_p3), 104   ;;  %vm966_vm4 = vcmask (!%p207_p3), 1043456   ;;  %vm1490_vm5 = vcmask (!%p207_p3), 130048  }
   0x9   : > { %295 = vst.msk [vmem:[#allocation2] sm:$0xff] (!%p207_p3), %vm294_vm2, %v1789_v5  ;;  %296 = vst.msk [vmem:[#allocation2 + $0x8] sm:$0xff] (!%p207_p3), %vm294_vm2, %v1789_v5  ;;  %v1876_v7 = vshrl.u32 (!%p207_p3), %v873_v6, 7  ;;  %v1878_v8 = vand.u32 (!%p207_p3), 127, %v873_v6  ;;  %1735 = vset.pattern.permute.xlu0 (!%p207_p3), %v1790_v15  ;;  %1736 = vset.pattern.permute.xlu1 (!%p207_p3), %v1790_v15  ;;  %s1794_s29 = smov (!%p207_p3), 8   ;;  %s1795_s30 = smov (!%p207_p3), 16  }
   0xa   : > { %297 = vst.msk [vmem:[#allocation2 + $0x10] sm:$0xff] (!%p207_p3), %vm294_vm2, %v1789_v5  ;;  %298 = vst.msk [vmem:[#allocation2 + $0x18] sm:$0xff] (!%p207_p3), %vm294_vm2, %v1789_v5  ;;  %s1796_s4 = smov (!%p207_p3), 24   ;;  %vm1492_vm6 = vcmask (!%p207_p3), 195584   ;;  %vm1495_vm7 = vcmask (!%p207_p3), 257024  }
   0xb   : > { %299 = vst.msk [vmem:[#allocation3] sm:$0xff] (!%p207_p3), %vm294_vm2, %v1787_v0  ;;  %300 = vst.msk [vmem:[#allocation3 + $0x8] sm:$0xff] (!%p207_p3), %vm294_vm2, %v1787_v0  ;;  %vm881_vm3 = vcmp.le.s32.totalorder (!%p207_p3), %v1878_v8, %v1876_v7 }
   0xc   : > { %301 = vst.msk [vmem:[#allocation3 + $0x10] sm:$0xff] (!%p207_p3), %vm294_vm2, %v1787_v0  ;;  %302 = vst.msk [vmem:[#allocation3 + $0x18] sm:$0xff] (!%p207_p3), %vm294_vm2, %v1787_v0 }
   0xe   : > { %s2008_s12 = smov (!%p252_p4, %s1777_s12), 1 }
   0xf   : > { %s1849_s16 = sshll.u32 %s2008_s12, 2 }
  0x10   : > { %s267_s19 = scalar_lea.vmem %s2000_s1, %s1849_s16  ;;  %s258_s22 = scalar_lea.vmem %s1999_s0, %s1849_s16  ;;  %v1892_v18 = vld [vmem:[#allocation2] sm:$0xff]  ;;  %v1944_v60 = vld [vmem:[#allocation2 + $0x8] sm:$0xff] }
  0x11   : > { %v871_v1 = vld [vmem:[%s267_s19] sm:$0xf]  ;;  %s278_s28 = scalar_lea.vmem %s2001_s2, %s1849_s16  ;;  %v1346_v5 = vld [vmem:[#allocation2 + $0x18] sm:$0xff]  ;;  %s287_s7 = scalar_lea.vmem %s2002_s3, %s1849_s16 }
  0x12   : > { %v888_v2 = vsel %vm303_vm0, %v871_v1, 0  ;;  %v870_v3 = vld [vmem:[%s258_s22] sm:$0xf]  ;;  %v1627_v16 = vcombine.low %v871_v1, %v871_v1  ;;  %v1210_v1 = vld [vmem:[#allocation2 + $0x10] sm:$0xff] }
  0x13   : > { %1654 = vmatpush3.bf16.xpose.msra.mxu0 %v888_v2  ;;  %v882_v4 = vmul.bf16 1052065461, %v870_v3  ;;  %v1906_v22 = vld [vmem:[%s278_s28] sm:$0xf] }
  0x14   : > { %1671 = vmatprep.subr.bf16.mxu0 %v1787_v0  ;;  %1021 = vrot.lane.b32.xlu1 %v1627_v16, %s1791_s23  ;;  %v968_v23 = vsel %vm966_vm4, %v1906_v22, 0  ;;  %v1629_v8 = vcombine.low %v1906_v22, %v1906_v22 }
  0x15   : > { %v1626_v17 = vcombine.low %v882_v4, %v882_v4  ;;  %1660 = vmatpush3.bf16.msra.mxu1 %v968_v23 }
  0x16   : > { %1665 = vmatprep.subr.bf16.mxu1 %v1787_v0 }
  0x18   : > { %1016 = vrot.lane.b32.xlu1 %v1626_v17, %s1791_s23 }
  0x1a   : > { %1656 = vmatmul.mubr.msk.bf16.vlgmr.msra.gmra.mrb[0].mxu0 %vm303_vm0, %v882_v4 }
  0x1b   : > { %1673 = vmatprep.mubr.msk.bf16.mxu0 %vm1788_vm1, %v1787_v0 }
  0x1c   : > { %1160 = vrot.lane.b32.xlu1 %v1627_v16, %s1792_s24 }
  0x20   : > { %1158 = vrot.lane.b32.xlu1 %v1626_v17, %s1792_s24 }
  0x24   : > { %1296 = vrot.lane.b32.xlu1 %v1627_v16, %s1793_s25 }
  0x28   : > { %1294 = vrot.lane.b32.xlu1 %v1626_v17, %s1793_s25 }
  0x86   : > { %v1022_v27 = vpop.permute.xlu1 %1021 }
  0x87   : > { %v1027_v30 = vsel %vm303_vm0, %v1022_v27, 0 }
  0x8a   : > { %v1017_v28 = vpop.permute.xlu1 %1016 }
  0x8e   : > { %v1161_v32 = vpop.permute.xlu1 %1160 }
  0x8f   : > { %v1166_v34 = vsel %vm303_vm0, %v1161_v32, 0 }
  0x92   : > { %v1159_v33 = vpop.permute.xlu1 %1158 }
  0x96   : > { %v1297_v35 = vpop.permute.xlu1 %1296 }
  0x97   : > { %v1302_v36 = vsel %vm303_vm0, %v1297_v35, 0 }
  0x9a   : > { %v1295_v37 = vpop.permute.xlu1 %1294 }
  0xed   : > { %v924_v9 = vpop.f32.mrb[0].mxu0 }
  0xee   : > { %v930_v10 = vsel %vm881_vm3, %v924_v9, -1e+30  ;;  %v1657_v11 = vpop.f32.mrb[1].mxu0 }
  0xef   : > { %v927_v12 = vpop.f32.mrb[2].mxu0  ;;  %v932_v13 = vsel %vm303_vm0, %v930_v10, -inf }
  0xf0   : > { %933 = vmax.xlane.f32.xlu0 %v932_v13  ;;  %v1658_v14 = vpop.f32.mrb[3].mxu0 }
 0x17d   : > { %v934_v19 = vpop.xlane.xlu0 %933 }
 0x17e   : > { %v1895_v20 = vmax.f32 %v1892_v18, %v934_v19 }
 0x180   : > { %v936_v21 = vsub.f32 %v1892_v18, %v1895_v20  ;;  %1012 = vst.msk [vmem:[#allocation2] sm:$0xff] %vm294_vm2, %v1895_v20  ;;  %941 = vperm.xlu0 %1735, %v1895_v20  }
 0x1ff   : > { %v942_v24 = vpop.permute.xlu0 %941 }
 0x200   : > { %v944_v25 = vsub.f32 %v930_v10, %v942_v24 }
 0x202   : > { %v945_v26 = vmul.f32 1.442695, %v944_v25 }
 0x204   : > { %1739 = vpow2.f32 %v945_v26 }
 0x20e   : > { %v1911_v29 = vpop.eup %1739 }
 0x20f   : > { %v962_v31 = vpack.c.bf16 %v1911_v29, %v1911_v29  ;;  %v949_v10 = vsel %vm303_vm0, %v1911_v29, 0.0 }
 0x211   : > { %1662 = vmatmul.mubr.msk.bf16.vlgmr.msra.gmra.mrb[0].mxu1 %vm303_vm0, %v962_v31 }
 0x212   : > { %1666 = vmatpush3.bf16.xpose.msra.mxu1 %v1027_v30  ;;  %1667 = vmatprep.mubr.msk.bf16.mxu1 %vm1788_vm1, %v1787_v0 }
 0x213   : > { %1677 = vmatprep.subr.bf16.mxu1 %v1787_v0 }
 0x219   : > { %1668 = vmatmul.mubr.msk.bf16.vlgmr.msra.gmra.mrb[4].mxu1 %vm303_vm0, %v1017_v28 }
 0x21a   : > { %1678 = vmatpush3.bf16.xpose.msra.mxu1 %v1166_v34  ;;  %1679 = vmatprep.mubr.msk.bf16.mxu1 %vm1788_vm1, %v1787_v0 }
 0x21b   : > { %1689 = vmatprep.subr.bf16.mxu1 %v1787_v0 }
 0x221   : > { %1680 = vmatmul.mubr.msk.bf16.vlgmr.msra.gmra.mrb[8].mxu1 %vm303_vm0, %v1159_v33 }
 0x222   : > { %1690 = vmatpush3.bf16.xpose.msra.mxu1 %v1302_v36  ;;  %1691 = vmatprep.mubr.msk.bf16.mxu1 %vm1788_vm1, %v1787_v0  ;;  %v937_v36 = vmul.f32 1.442695, %v936_v21 }
 0x229   : > { %1692 = vmatmul.mubr.msk.bf16.vlgmr.msra.gmra.mrb[12].mxu1 %vm303_vm0, %v1295_v37 }
 0x2e4   : > { %v1930_v38 = vpop.f32.mrb[0].mxu1 }
 0x2e5   : > { %v1663_v39 = vpop.f32.mrb[1].mxu1 }
 0x2e6   : > { %v1007_v40 = vpop.f32.mrb[2].mxu1 }
 0x2e7   : > { %v1664_v41 = vpop.f32.mrb[3].mxu1 }
 0x2ec   : > { %v1063_v42 = vpop.f32.mrb[4].mxu1 }
 0x2ed   : > { %v1069_v43 = vsel %vm881_vm3, %v1063_v42, -1e+30  ;;  %v1669_v44 = vpop.f32.mrb[5].mxu1 }
 0x2ee   : > { %v1066_v45 = vpop.f32.mrb[6].mxu1  ;;  %v1072_v46 = vsel %vm303_vm0, %v1069_v43, -inf  ;;  %v947_v44 = vld [vmem:[#allocation3] sm:$0xff] }
 0x2ef   : > { %1073 = vmax.xlane.f32.xlu1 %v1072_v46  ;;  %v1670_v47 = vpop.f32.mrb[7].mxu1 }
 0x2f4   : > { %v1202_v48 = vpop.f32.mrb[8].mxu1 }
 0x2f5   : > { %v1208_v49 = vsel %vm881_vm3, %v1202_v48, -1e+30  ;;  %v1681_v50 = vpop.f32.mrb[9].mxu1 }
 0x2f6   : > { %v1205_v51 = vpop.f32.mrb[10].mxu1  ;;  %v1211_v52 = vsel %vm303_vm0, %v1208_v49, -inf }
 0x2f7   : > { %1212 = vmax.xlane.f32.xlu0 %v1211_v52  ;;  %v1682_v53 = vpop.f32.mrb[11].mxu1 }
 0x2f8   : > { %v1227_v53 = vld [vmem:[#allocation3 + $0x10] sm:$0xff] }
 0x2fc   : > { %v1338_v54 = vpop.f32.mrb[12].mxu1 }
 0x2fd   : > { %v1344_v55 = vsel %vm881_vm3, %v1338_v54, -1e+30  ;;  %v1693_v56 = vpop.f32.mrb[13].mxu1 }
 0x2fe   : > { %v1341_v57 = vpop.f32.mrb[14].mxu1  ;;  %v1347_v58 = vsel %vm303_vm0, %v1344_v55, -inf }
 0x2ff   : > { %1348 = vmax.xlane.f32.xlu1 %v1347_v58  ;;  %v1694_v59 = vpop.f32.mrb[15].mxu1  ;;  %v1363_v58 = vld [vmem:[#allocation3 + $0x18] sm:$0xff] }
 0x300   : > { %v955_v59 = vld [vmem:[#allocation4] sm:$0xff] }
 0x37c   : > { %v1074_v61 = vpop.xlane.xlu1 %1073 }
 0x37d   : > { %v1075_v62 = vmax.f32 %v1944_v60, %v1074_v61 }
 0x37f   : > { %v1076_v63 = vsub.f32 %v1944_v60, %v1075_v62  ;;  %1157 = vst.msk [vmem:[#allocation2 + $0x8] sm:$0xff] %vm294_vm2, %v1075_v62  ;;  %1081 = vperm.xlu1 %1736, %v1075_v62  }
 0x381   : > { %v1077_v39 = vmul.f32 1.442695, %v1076_v63 }
 0x384   : > { %v1213_v2 = vpop.xlane.xlu0 %1212 }
 0x385   : > { %v1214_v3 = vmax.f32 %v1210_v1, %v1213_v2 }
 0x387   : > { %v1215_v4 = vsub.f32 %v1210_v1, %v1214_v3  ;;  %1293 = vst.msk [vmem:[#allocation2 + $0x10] sm:$0xff] %vm294_vm2, %v1214_v3  ;;  %1220 = vperm.xlu0 %1735, %v1214_v3  }
 0x389   : > { %v1216_v41 = vmul.f32 1.442695, %v1215_v4 }
 0x38c   : > { %v1349_v6 = vpop.xlane.xlu1 %1348 }
 0x38d   : > { %v1350_v7 = vmax.f32 %v1346_v5, %v1349_v6 }
 0x38f   : > { %v1351_v9 = vsub.f32 %v1346_v5, %v1350_v7  ;;  %1429 = vst.msk [vmem:[#allocation2 + $0x18] sm:$0xff] %vm294_vm2, %v1350_v7  ;;  %1356 = vperm.xlu1 %1736, %v1350_v7  }
 0x391   : > { %v1352_v40 = vmul.f32 1.442695, %v1351_v9 }
 0x393   : > { %1107 = vrot.lane.b32.xlu1 %v1629_v8, %s1791_s23 }
 0x397   : > { %1243 = vrot.lane.b32.xlu1 %v1629_v8, %s1792_s24 }
 0x39b   : > { %1379 = vrot.lane.b32.xlu1 %v1629_v8, %s1793_s25  ;;  %v1096_v8 = vld [vmem:[#allocation4 + $0x8] sm:$0xff] }
 0x3bf   : > { %950 = vadd.xlane.f32.xlu1 %v949_v10 }
 0x3fe   : > { %v1082_v11 = vpop.permute.xlu1 %1081 }
 0x3ff   : > { %v1084_v12 = vsub.f32 %v1069_v43, %v1082_v11 }
 0x401   : > { %v1085_v13 = vmul.f32 1.442695, %v1084_v12 }
 0x403   : > { %1741 = vpow2.f32 %v1085_v13 }
 0x406   : > { %v1221_v14 = vpop.permute.xlu0 %1220 }
 0x407   : > { %v1223_v15 = vsub.f32 %v1208_v49, %v1221_v14  ;;  %v1088_v49 = vld [vmem:[#allocation3 + $0x8] sm:$0xff] }
 0x409   : > { %v1224_v16 = vmul.f32 1.442695, %v1223_v15  ;;  %v1235_v15 = vld [vmem:[#allocation4 + $0x10] sm:$0xff] }
 0x40b   : > { %1743 = vpow2.f32 %v1224_v16 }
 0x40d   : > { %v1742_v17 = vpop.eup %1741 }
 0x40e   : > { %v1357_v19 = vpop.permute.xlu1 %1356  ;;  %v1090_v22 = vsel %vm303_vm0, %v1742_v17, 0.0  ;;  %v1103_v28 = vpack.c.bf16 %v1742_v17, %v1742_v17 }
 0x40f   : > { %v1359_v23 = vsub.f32 %v1344_v55, %v1357_v19  ;;  %1091 = vadd.xlane.f32.xlu0 %v1090_v22 }
 0x411   : > { %v1360_v24 = vmul.f32 1.442695, %v1359_v23 }
 0x412   : > { %v1108_v25 = vpop.permute.xlu1 %1107 }
 0x413   : > { %1745 = vpow2.f32 %v1360_v24  ;;  %v1113_v26 = vsel %vm966_vm4, %v1108_v25, 0 }
 0x414   : > { %1672 = vmatpush3.bf16.msra.mxu0 %v1113_v26  ;;  %1747 = vpow2.f32 %v937_v36  ;;  %v1371_v26 = vld [vmem:[#allocation4 + $0x18] sm:$0xff] }
 0x415   : > { %v1744_v27 = vpop.eup %1743  ;;  %1683 = vmatprep.subr.bf16.mxu0 %v1787_v0  ;;  %1749 = vpow2.f32 %v1077_v39 }
 0x416   : > { %v1229_v29 = vsel %vm303_vm0, %v1744_v27, 0.0  ;;  %v1244_v30 = vpop.permute.xlu1 %1243  ;;  %v1242_v34 = vpack.c.bf16 %v1744_v27, %v1744_v27  ;;  %1751 = vpow2.f32 %v1352_v40 }
 0x417   : > { %1230 = vadd.xlane.f32.xlu0 %v1229_v29  ;;  %1674 = vmatmul.mubr.msk.bf16.vlgmr.msra.gmra.mrb[4].mxu0 %vm303_vm0, %v1103_v28  ;;  %v1249_v31 = vsel %vm966_vm4, %v1244_v30, 0  ;;  %1753 = vpow2.f32 %v1216_v41 }
 0x418   : > { %1684 = vmatpush3.bf16.msra.mxu0 %v1249_v31  ;;  %1685 = vmatprep.mubr.msk.bf16.mxu0 %vm1788_vm1, %v1787_v0 }
 0x419   : > { %1695 = vmatprep.subr.bf16.mxu0 %v1787_v0 }
 0x41a   : > { %v1380_v32 = vpop.permute.xlu1 %1379 }
 0x41b   : > { %v1385_v35 = vsel %vm966_vm4, %v1380_v32, 0 }
 0x41d   : > { %v1746_v33 = vpop.eup %1745 }
 0x41e   : > { %v1365_v37 = vsel %vm303_vm0, %v1746_v33, 0.0  ;;  %v1378_v42 = vpack.c.bf16 %v1746_v33, %v1746_v33  ;;  %v1748_v18 = vpop.eup %1747 }
 0x41f   : > { %1686 = vmatmul.mubr.msk.bf16.vlgmr.msra.gmra.mrb[8].mxu0 %vm303_vm0, %v1242_v34  ;;  %1366 = vadd.xlane.f32.xlu1 %v1365_v37  ;;  %v1750_v20 = vpop.eup %1749 }
 0x420   : > { %1696 = vmatpush3.bf16.msra.mxu0 %v1385_v35  ;;  %1697 = vmatprep.mubr.msk.bf16.mxu0 %vm1788_vm1, %v1787_v0  ;;  %v1752_v21 = vpop.eup %1751  ;;  %v948_v0 = vmul.f32 %v1748_v18, %v947_v44  ;;  %v1089_v50 = vmul.f32 %v1750_v20, %v1088_v49 }
 0x421   : > { %v1754_v43 = vpop.eup %1753  ;;  %v1364_v60 = vmul.f32 %v1752_v21, %v1363_v58 }
 0x422   : > { %v1228_v54 = vmul.f32 %v1754_v43, %v1227_v53 }
 0x427   : > { %1698 = vmatmul.mubr.msk.bf16.vlgmr.msra.gmra.mrb[12].mxu0 %vm303_vm0, %v1378_v42 }
 0x42d   : > { %958 = vperm.xlu0 %1735, %v1748_v18  }
 0x430   : > { %1099 = vperm.xlu1 %1736, %v1750_v20  }
 0x431   : > { %1374 = vperm.xlu0 %1735, %v1752_v21  }
 0x434   : > { %1238 = vperm.xlu1 %1736, %v1754_v43  }
 0x44c   : > { %v951_v45 = vpop.xlane.xlu1 %950 }
 0x44d   : > { %v952_v46 = vadd.f32 %v951_v45, %v948_v0 }
 0x44f   : > { %954 = vst.msk [vmem:[#allocation3] sm:$0xff] %vm294_vm2, %v952_v46 }
 0x456   : > { %v1433_v47 = vld [vmem:[#allocation3] sm:$0xff] }
 0x457   : > { %1755 = vrcp.f32 %v1433_v47 }
 0x461   : > { %v1756_v48 = vpop.eup %1755 }
 0x462   : > { %1448 = vperm.xlu1 %1736, %v1756_v48  }
 0x49c   : > { %v1092_v51 = vpop.xlane.xlu0 %1091 }
 0x49d   : > { %v1093_v52 = vadd.f32 %v1092_v51, %v1089_v50 }
 0x49f   : > { %1094 = vst.msk [vmem:[#allocation3 + $0x8] sm:$0xff] %vm294_vm2, %v1093_v52 }
 0x4a4   : > { %v1231_v55 = vpop.xlane.xlu0 %1230 }
 0x4a5   : > { %v1232_v56 = vadd.f32 %v1231_v55, %v1228_v54 }
 0x4a6   : > { %v1434_v57 = vld [vmem:[#allocation3 + $0x8] sm:$0xff] }
 0x4a7   : > { %1233 = vst.msk [vmem:[#allocation3 + $0x10] sm:$0xff] %vm294_vm2, %v1232_v56  ;;  %1757 = vrcp.f32 %v1434_v57 }
 0x4ac   : > { %v1367_v61 = vpop.xlane.xlu1 %1366  ;;  %v959_v62 = vpop.permute.xlu0 %958 }
 0x4ad   : > { %v1368_v63 = vadd.f32 %v1367_v61, %v1364_v60  ;;  %v961_v1 = vmul.f32 %v959_v62, %v955_v59 }
 0x4ae   : > { %v1435_v2 = vld [vmem:[#allocation3 + $0x10] sm:$0xff] }
 0x4af   : > { %1369 = vst.msk [vmem:[#allocation3 + $0x18] sm:$0xff] %vm294_vm2, %v1368_v63  ;;  %v1010_v3 = vadd.f32 %v1930_v38, %v961_v1  ;;  %1759 = vrcp.f32 %v1435_v2 }
 0x4b0   : > { %v1100_v9 = vpop.permute.xlu1 %1099  ;;  %v1375_v27 = vpop.permute.xlu0 %1374 }
 0x4b1   : > { %v1758_v4 = vpop.eup %1757  ;;  %1011 = vst.msk [vmem:[#allocation4] sm:$0xff] %vm303_vm0, %v1010_v3  ;;  %v1102_v10 = vmul.f32 %v1100_v9, %v1096_v8  ;;  %v1377_v28 = vmul.f32 %v1375_v27, %v1371_v26 }
 0x4b2   : > { %1456 = vperm.xlu0 %1735, %v1758_v4  }
 0x4b4   : > { %v1239_v16 = vpop.permute.xlu1 %1238 }
 0x4b5   : > { %v1241_v17 = vmul.f32 %v1239_v16, %v1235_v15 }
 0x4b6   : > { %v1436_v5 = vld [vmem:[#allocation3 + $0x18] sm:$0xff] }
 0x4b7   : > { %1761 = vrcp.f32 %v1436_v5 }
 0x4b8   : > { %v1445_v21 = vld [vmem:[#allocation4] sm:$0xff] }
 0x4b9   : > { %v1760_v6 = vpop.eup %1759 }
 0x4ba   : > { %1464 = vperm.xlu1 %1736, %v1760_v6  }
 0x4c1   : > { %v1762_v7 = vpop.eup %1761 }
 0x4c2   : > { %1472 = vperm.xlu0 %1735, %v1762_v7  }
 0x4e1   : > { %v1449_v37 = vpop.permute.xlu1 %1448 }
 0x4e2   : > { %v1451_v44 = vmul.f32 %v1449_v37, %v1445_v21 }
 0x4ea   : > { %v1149_v11 = vpop.f32.mrb[4].mxu0 }
 0x4eb   : > { %v1155_v12 = vadd.f32 %v1149_v11, %v1102_v10  ;;  %v1675_v13 = vpop.f32.mrb[5].mxu0 }
 0x4ec   : > { %v1152_v14 = vpop.f32.mrb[6].mxu0 }
 0x4ed   : > { %1156 = vst.msk [vmem:[#allocation4 + $0x8] sm:$0xff] %vm303_vm0, %v1155_v12  ;;  %v1676_v38 = vpop.f32.mrb[7].mxu0 }
 0x4f2   : > { %v1285_v19 = vpop.f32.mrb[8].mxu0 }
 0x4f3   : > { %v1291_v22 = vadd.f32 %v1285_v19, %v1241_v17  ;;  %v1687_v23 = vpop.f32.mrb[9].mxu0 }
 0x4f4   : > { %v1288_v24 = vpop.f32.mrb[10].mxu0  ;;  %v1453_v35 = vld [vmem:[#allocation4 + $0x8] sm:$0xff] }
 0x4f5   : > { %1292 = vst.msk [vmem:[#allocation4 + $0x10] sm:$0xff] %vm303_vm0, %v1291_v22  ;;  %v1688_v25 = vpop.f32.mrb[11].mxu0 }
 0x4fa   : > { %v1421_v29 = vpop.f32.mrb[12].mxu0 }
 0x4fb   : > { %v1427_v30 = vadd.f32 %v1421_v29, %v1377_v28  ;;  %v1699_v31 = vpop.f32.mrb[13].mxu0 }
 0x4fc   : > { %v1424_v32 = vpop.f32.mrb[14].mxu0  ;;  %v1461_v40 = vld [vmem:[#allocation4 + $0x10] sm:$0xff] }
 0x4fd   : > { %1428 = vst.msk [vmem:[#allocation4 + $0x18] sm:$0xff] %vm303_vm0, %v1427_v30  ;;  %v1700_v33 = vpop.f32.mrb[15].mxu0 }
 0x504   : > { %v1469_v18 = vld [vmem:[#allocation4 + $0x18] sm:$0xff] }
 0x531   : > { %v1457_v34 = vpop.permute.xlu0 %1456 }
 0x532   : > { %v1459_v36 = vmul.f32 %v1457_v34, %v1453_v35 }
 0x534   : > { %1477 = vrot.lane.b32.xlu1 %v1459_v36, %s1794_s29 }
 0x539   : > { %v1465_v39 = vpop.permute.xlu1 %1464 }
 0x53a   : > { %v1467_v41 = vmul.f32 %v1465_v39, %v1461_v40 }
 0x53c   : > { %1481 = vrot.lane.b32.xlu0 %v1467_v41, %s1795_s30 }
 0x541   : > { %v1473_v42 = vpop.permute.xlu0 %1472 }
 0x542   : > { %v1475_v20 = vmul.f32 %v1473_v42, %v1469_v18 }
 0x544   : > { %1485 = vrot.lane.b32.xlu1 %v1475_v20, %s1796_s4 }
 0x5a6   : > { %v1478_v43 = vpop.permute.xlu1 %1477 }
 0x5a7   : > { %v1489_v45 = vsel %vm303_vm0, %v1451_v44, %v1478_v43 }
 0x5ae   : > { %v1482_v0 = vpop.permute.xlu0 %1481 }
 0x5af   : > { %v1491_v46 = vsel %vm1490_vm5, %v1489_v45, %v1482_v0 }
 0x5b6   : > { %v1486_v47 = vpop.permute.xlu1 %1485 }
 0x5b7   : > { %v1493_v48 = vsel %vm1492_vm6, %v1491_v46, %v1486_v47 }
 0x5b8   : > { %v1494_v49 = vpack.c.bf16 %v1493_v48, %v1493_v48 }
 0x5ba   : > { %1496 = vst.msk [vmem:[%s287_s7] sm:$0xf] %vm1495_vm7, %v1494_v49 }
 0x5bb PF: > { %s13_s14 = sadd.s32 1, %s1785_s14   ;;  %s2003_s12 = smov %s1781_s13 }
 0x5bc   : > { %p10_p5 = scmp.ge.s32.totalorder %s13_s14, 4   ;;  %s2004_s13 = smov %s2006_s15 }
 0x5be   :  { %12 = sbr.rel (!%p10_p5) target bundleno = 2 (0x2), region = 105 }

// kernel: gpt_forward.28
= control target key start
LH: loop header
LB: loop body
LE: loop exit
PB: predicated region body
PF: predicated region fallthrough
CT: control target
= control target key end

     0   :  { %vm22_vm0 = vcmask 261120   ;;  %v279_v0 = vmov 0.0   ;;  %vm280_vm1 = vmmov 0   ;;  %s354_s1 = inlined_call_operand.vmem [shape: bf16[128,32], index: 1, kind: input, shape index: {}]   ;;  %s355_s0 = inlined_call_operand.vmem [shape: bf16[16,128], index: 0, kind: input, shape index: {}]   ;;  %s356_s2 = inlined_call_operand.vmem [shape: f32[1,32], index: 2, kind: input, shape index: {}]   ;;  %s357_s3 = inlined_call_operand.vmem [shape: f32[16,32], index: 3, kind: input, shape index: {}]   ;;  %s358_s4 = inlined_call_operand.vmem [shape: f32[16,32], index: 4, kind: output, shape index: {}]  }
   0x1   :  { %240 = vmatprep.subr.bf16.mxu0 %v279_v0  ;;  %v262_v1 = vld [vmem:[%s354_s1] sm:$0xff]   ;;  %256 = vmatprep.mubr.msk.bf16.mxu0 %vm280_vm1, %v279_v0  ;;  %23 = vst.msk [vmem:[#allocation2] sm:$0xff] %vm22_vm0, %v279_v0  ;;  %24 = vst.msk [vmem:[#allocation2 + $0x8] sm:$0xff] %vm22_vm0, %v279_v0  ;;  %v263_v2 = vld [vmem:[%s354_s1 + $0x8] sm:$0xff]  }
   0x2   :  { %241 = vmatpush3.bf16.msra.mxu0 %v262_v1  ;;  %v264_v3 = vld [vmem:[%s354_s1 + $0x10] sm:$0xff]   ;;  %v265_v4 = vld [vmem:[%s354_s1 + $0x18] sm:$0xff]   ;;  %v266_v5 = vld [vmem:[%s354_s1 + $0x20] sm:$0xff]  }
   0x3   :  { %242 = vmatprep.subr.bf16.mxu0 %v279_v0  ;;  %v267_v6 = vld [vmem:[%s354_s1 + $0x28] sm:$0xff]   ;;  %v268_v7 = vld [vmem:[%s354_s1 + $0x30] sm:$0xff]   ;;  %v269_v8 = vld [vmem:[%s354_s1 + $0x38] sm:$0xff]  }
   0x4   :  { %v270_v9 = vld [vmem:[%s355_s0] sm:$0xff]  }
   0x5   :  { %v230_v18 = vld [vmem:[%s356_s2] ss:$0 sm:$0xff] }
   0x6   :  { %243 = vmatpush3.bf16.msra.mxu0 %v263_v2 }
   0x7   :  { %244 = vmatprep.subr.bf16.mxu0 %v279_v0 }
   0x8   :  { %v25_v10 = vld [vmem:[#allocation2] sm:$0xff]  ;;  %v26_v12 = vld [vmem:[#allocation2 + $0x8] sm:$0xff] }
   0xa   :  { %245 = vmatpush3.bf16.msra.mxu0 %v264_v3 }
   0xb   :  { %246 = vmatprep.subr.bf16.mxu0 %v279_v0 }
   0xe   :  { %247 = vmatpush3.bf16.msra.mxu0 %v265_v4  ;;  %v211_v4 = vld [vmem:[%s357_s3] sm:$0xff] }
   0xf   :  { %248 = vmatprep.subr.bf16.mxu0 %v279_v0 }
  0x12   :  { %249 = vmatpush3.bf16.msra.mxu0 %v266_v5 }
  0x13   :  { %250 = vmatprep.subr.bf16.mxu0 %v279_v0 }
  0x16   :  { %251 = vmatpush3.bf16.msra.mxu0 %v267_v6 }
  0x17   :  { %252 = vmatprep.subr.bf16.mxu0 %v279_v0 }
  0x1a   :  { %253 = vmatpush3.bf16.msra.mxu0 %v268_v7 }
  0x1b   :  { %254 = vmatprep.subr.bf16.mxu0 %v279_v0 }
  0x1e   :  { %255 = vmatpush3.bf16.msra.mxu0 %v269_v8 }
  0x21   :  { %257 = vmatmul.mubr.bf16.vlgmr.msra.gmra.mrb[0].mxu0 %v270_v9  ;;  %v212_v9 = vld [vmem:[%s357_s3 + $0x8] sm:$0xff] }
  0xf4   :  { %v133_v11 = vpop.f32.mrb[0].mxu0 }
  0xf5   :  { %v140_v13 = vadd.f32 %v133_v11, %v25_v10  ;;  %v258_v14 = vpop.f32.mrb[1].mxu0 }
  0xf6   :  { %v136_v15 = vpop.f32.mrb[2].mxu0 }
  0xf7   :  { %143 = vst.msk [vmem:[#allocation2] sm:$0xff] %vm22_vm0, %v140_v13  ;;  %v141_v16 = vadd.f32 %v136_v15, %v26_v12  ;;  %v259_v17 = vpop.f32.mrb[3].mxu0 }
  0xf9   :  { %144 = vst.msk [vmem:[#allocation2 + $0x8] sm:$0xff] %vm22_vm0, %v141_v16 }
  0xfe   :  { %v148_v19 = vld [vmem:[#allocation2] sm:$0xff] }
  0xff   :  { %v157_v20 = vadd.f32 %v230_v18, %v148_v19 }
 0x100   :  { %v149_v21 = vld [vmem:[#allocation2 + $0x8] sm:$0xff] }
 0x101   :  { %v159_v22 = vmul.f32 0.70710677, %v157_v20  ;;  %v158_v23 = vadd.f32 %v230_v18, %v149_v21  ;;  %v205_v1 = vmul.f32 0.5, %v157_v20 }
 0x103   :  { %v161_v24 = vand.u32 2147483647, %v159_v22  ;;  %v160_v25 = vmul.f32 0.70710677, %v158_v23  ;;  %vm199_vm2 = vcmp.ge.f32.partialorder %v159_v22, 0.0  ;;  %v206_v7 = vmul.f32 0.5, %v158_v23 }
 0x105   :  { %v163_v26 = vmul.f32 0.3275911, %v161_v24  ;;  %v162_v27 = vand.u32 2147483647, %v160_v25  ;;  %v187_v31 = vsub.f32 0.0, %v161_v24  ;;  %vm200_vm3 = vcmp.ge.f32.partialorder %v160_v25, 0.0 }
 0x107   :  { %v165_v28 = vadd.f32 1.0, %v163_v26  ;;  %v164_v29 = vmul.f32 0.3275911, %v162_v27  ;;  %v188_v32 = vsub.f32 0.0, %v162_v27  ;;  %v189_v34 = vmul.f32 %v187_v31, %v161_v24 }
 0x109   :  { %271 = vrcp.f32 %v165_v28  ;;  %v166_v30 = vadd.f32 1.0, %v164_v29  ;;  %v190_v38 = vmul.f32 %v188_v32, %v162_v27  ;;  %v191_v39 = vmul.f32 1.442695, %v189_v34 }
 0x10b   :  { %273 = vrcp.f32 %v166_v30  ;;  %v193_v44 = vmul.f32 1.442695, %v190_v38 }
 0x10c   :  { %275 = vpow2.f32 %v191_v39 }
 0x10d   :  { %277 = vpow2.f32 %v193_v44 }
 0x113   :  { %v272_v33 = vpop.eup %271 }
 0x114   :  { %v169_v35 = vmul.f32 1.0614054, %v272_v33 }
 0x115   :  { %v274_v36 = vpop.eup %273 }
 0x116   :  { %v171_v37 = vadd.f32 -1.4531521, %v169_v35  ;;  %v170_v40 = vmul.f32 1.0614054, %v274_v36  ;;  %v276_v55 = vpop.eup %275 }
 0x117   :  { %v278_v59 = vpop.eup %277 }
 0x118   :  { %v173_v41 = vmul.f32 %v272_v33, %v171_v37  ;;  %v172_v42 = vadd.f32 -1.4531521, %v170_v40 }
 0x11a   :  { %v175_v43 = vadd.f32 1.4214138, %v173_v41  ;;  %v174_v45 = vmul.f32 %v274_v36, %v172_v42 }
 0x11c   :  { %v177_v46 = vmul.f32 %v272_v33, %v175_v43  ;;  %v176_v47 = vadd.f32 1.4214138, %v174_v45 }
 0x11e   :  { %v179_v48 = vadd.f32 -0.28449672, %v177_v46  ;;  %v178_v49 = vmul.f32 %v274_v36, %v176_v47 }
 0x120   :  { %v181_v50 = vmul.f32 %v272_v33, %v179_v48  ;;  %v180_v51 = vadd.f32 -0.28449672, %v178_v49 }
 0x122   :  { %v183_v52 = vadd.f32 0.2548296, %v181_v50  ;;  %v182_v53 = vmul.f32 %v274_v36, %v180_v51 }
 0x124   :  { %v185_v54 = vmul.f32 %v272_v33, %v183_v52  ;;  %v184_v56 = vadd.f32 0.2548296, %v182_v53 }
 0x126   :  { %v195_v57 = vmul.f32 %v276_v55, %v185_v54  ;;  %v186_v58 = vmul.f32 %v274_v36, %v184_v56 }
 0x128   :  { %v197_v60 = vsub.f32 1.0, %v195_v57  ;;  %v196_v61 = vmul.f32 %v278_v59, %v186_v58 }
 0x12a   :  { %v201_v62 = vsub.f32 0.0, %v197_v60  ;;  %v198_v63 = vsub.f32 1.0, %v196_v61 }
 0x12c   :  { %v203_v0 = vsel %vm199_vm2, %v197_v60, %v201_v62  ;;  %v202_v3 = vsub.f32 0.0, %v198_v63 }
 0x12d   :  { %v207_v2 = vadd.f32 1.0, %v203_v0 }
 0x12e   :  { %v204_v6 = vsel %vm200_vm3, %v198_v63, %v202_v3 }
 0x12f   :  { %v209_v5 = vmul.f32 %v207_v2, %v205_v1  ;;  %v208_v8 = vadd.f32 1.0, %v204_v6 }
 0x131   :  { %v213_v10 = vadd.f32 %v211_v4, %v209_v5  ;;  %v210_v11 = vmul.f32 %v208_v8, %v206_v7 }
 0x133   :  { %215 = vst.msk [vmem:[%s358_s4] sm:$0xff] %vm22_vm0, %v213_v10  ;;  %v214_v12 = vadd.f32 %v212_v9, %v210_v11 }
 0x135   :  { %216 = vst.msk [vmem:[%s358_s4 + $0x8] sm:$0xff] %vm22_vm0, %v214_v12 }

</bundles_post_ra>
